<compile_context>
chip_gen: v7x
topology: tpu7x:2x2x1
jax: 0.10.0
libtpu: 0.0.40
codegen_flags: <defaults>
</compile_context>

<pallas_src>
import functools

import jax
import jax.numpy as jnp
import numpy as np
from jax.experimental import pallas as pl
from jax.experimental.pallas import tpu as pltpu


def _binreg_fused_kernel(inv_alpha_ref, qn_ref, inv_n_ref, first_ref, last_ref,
                         w_ref, wq_ref, out_ref,
                         cnt_ref, s_ref, ss_ref, se_ref, acc_ref,
                         *, max_nbins, tile_rows, chunk_rows):
    """Fused multi-layer reduction kernel.

    Grid axis 0 walks (tile_rows, 128) tiles of the packed weight buffer.
    SMEM metadata arrays (indexed by program_id):
      inv_alpha_ref : f32 1/alpha of this tile's layer
      qn_ref        : i32 Qn = -2**(nbit-1)
      inv_n_ref     : f32 1/num_elements of the layer (mean divisor)
      first_ref     : i32 1 iff first tile of its layer
      last_ref      : i32 1 iff last tile of its layer
    Scratch (persistent across grid steps):
      cnt/s/ss_ref  : (max_nbins, 128) per-bin lane partials of count / sum /
                      sum-of-squares of the shifted values d = w - wq
      se_ref        : (1, 128) lane partials of (wq - w)^2
      acc_ref       : (1,) SMEM running total loss over layers
    """
    pid = pl.program_id(0)

    @pl.when(pid == 0)
    def _init_total():
        acc_ref[0] = jnp.float32(0.0)

    @pl.when(first_ref[pid] == 1)
    def _init_layer():
        cnt_ref[...] = jnp.zeros_like(cnt_ref)
        s_ref[...] = jnp.zeros_like(s_ref)
        ss_ref[...] = jnp.zeros_like(ss_ref)
        se_ref[...] = jnp.zeros_like(se_ref)

    inv_alpha = inv_alpha_ref[pid]
    qn = qn_ref[pid]

    nchunks = tile_rows // chunk_rows

    def chunk_body(c, carry):
        cnt, s, ss, se = carry
        r0 = pl.multiple_of(c * chunk_rows, chunk_rows)
        w = w_ref[pl.ds(r0, chunk_rows), :]        # (chunk_rows, 128) f32
        wq = wq_ref[pl.ds(r0, chunk_rows), :]
        d = w - wq                  # within bin b this equals w - b*alpha
        d2 = d * d                  # also the per-element squared error
        se = se + jnp.sum(d2, axis=0, keepdims=True)

        # Integer bin index; sentinel-padded tail lands outside the layer's
        # real bin range and contributes d == 0 (exactly-zero variance).
        bidx = jnp.round(wq * inv_alpha).astype(jnp.int32) - qn

        cnt_rows, s_rows, ss_rows = [], [], []
        for b in range(max_nbins):                 # registers only, no temps
            m = bidx == b
            cnt_rows.append(jnp.sum(m.astype(jnp.float32), axis=0, keepdims=True))
            s_rows.append(jnp.sum(jnp.where(m, d, 0.0), axis=0, keepdims=True))
            ss_rows.append(jnp.sum(jnp.where(m, d2, 0.0), axis=0, keepdims=True))
        cnt = cnt + jnp.concatenate(cnt_rows, axis=0)
        s = s + jnp.concatenate(s_rows, axis=0)
        ss = ss + jnp.concatenate(ss_rows, axis=0)
        return cnt, s, ss, se

    init = (jnp.zeros((max_nbins, 128), jnp.float32),
            jnp.zeros((max_nbins, 128), jnp.float32),
            jnp.zeros((max_nbins, 128), jnp.float32),
            jnp.zeros((1, 128), jnp.float32))
    cnt, s, ss, se = jax.lax.fori_loop(0, nchunks, chunk_body, init,
                                       unroll=2 if nchunks > 1 else 1)

    # One VMEM accumulator update per grid step.
    cnt_ref[...] += cnt
    s_ref[...] += s
    ss_ref[...] += ss
    se_ref[...] += se

    @pl.when(last_ref[pid] == 1)
    def _finalize_layer():
        inv_n = inv_n_ref[pid]
        total = jnp.sum(se_ref[...]) * inv_n                 # 'mean' aggregation
        cntl = jnp.sum(cnt_ref[...], axis=1, keepdims=True)  # (max_nbins, 1)
        sl = jnp.sum(s_ref[...], axis=1, keepdims=True)
        ssl = jnp.sum(ss_ref[...], axis=1, keepdims=True)
        safe = jnp.maximum(cntl, 2.0)
        # Unbiased variance of the shifted values (== var of w in the bin).
        var = (ssl - sl * sl / safe) / (safe - 1.0)
        var = jnp.where(cntl > 1.5, var, 0.0)                # bins with > 1 elem
        acc_ref[0] += total + jnp.sum(var)

    @pl.when(pid == pl.num_programs(0) - 1)
    def _write_out():
        out_ref[0] = acc_ref[0]


def binreg_loss_pallas(quant_layers, lmbda, *, tile_rows_max=2048, chunk_rows=8):
    """Fused BinReg over a list of (weight_fp_clip, weight_q, nbit, alpha)."""
    if not quant_layers:
        return jnp.float32(0.0)

    # One tile size for all layers: large enough for the biggest layer's rows
    # (capped to bound VMEM: 2 operands x 2 pipeline buffers x 1 MiB at 2048).
    rows_needed = 1
    for wfp, _, _, _ in quant_layers:
        n = int(np.prod(wfp.shape))
        rows_needed = max(rows_needed, -(-n // 128))
    tile_rows = min(int(tile_rows_max), rows_needed)
    tile_rows = ((tile_rows + chunk_rows - 1) // chunk_rows) * chunk_rows
    tile_elems = tile_rows * 128

    w_parts, wq_parts = [], []
    inv_alpha_meta, qn_meta, inv_n_meta, first_meta, last_meta = [], [], [], [], []
    max_nbins = 2
    for wfp, wq, nbit, alpha in quant_layers:
        nbit = int(nbit)
        alpha = float(alpha)
        qn = -(2 ** (nbit - 1))
        qp = 2 ** (nbit - 1) - 1
        max_nbins = max(max_nbins, 2 ** nbit)

        w = wfp.reshape(-1).astype(jnp.float32)
        q = wq.reshape(-1).astype(jnp.float32)
        n = int(w.shape[0])
        n_tiles = -(-n // tile_elems)
        pad = n_tiles * tile_elems - n
        # Sentinel padding (same value in w and wq): d = 0 and the bin index
        # (qp + 2) - qn falls outside the layer's real bin range.
        sentinel = float((qp + 2) * alpha)
        w_parts.append(jnp.pad(w, (0, pad), constant_values=sentinel))
        wq_parts.append(jnp.pad(q, (0, pad), constant_values=sentinel))

        inv_alpha_meta += [1.0 / alpha] * n_tiles
        qn_meta += [qn] * n_tiles
        inv_n_meta += [1.0 / n] * n_tiles
        first_meta += [1] + [0] * (n_tiles - 1)
        last_meta += [0] * (n_tiles - 1) + [1]

    w_all = jnp.concatenate(w_parts).reshape(-1, 128)
    wq_all = jnp.concatenate(wq_parts).reshape(-1, 128)
    num_tiles = w_all.shape[0] // tile_rows

    smem_spec = pl.BlockSpec(memory_space=pltpu.MemorySpace.SMEM)
    tile_spec = pl.BlockSpec((tile_rows, 128), lambda i: (i, 0))

    kernel = functools.partial(_binreg_fused_kernel, max_nbins=int(max_nbins),
                               tile_rows=tile_rows, chunk_rows=chunk_rows)

    out = pl.pallas_call(
        kernel,
        out_shape=jax.ShapeDtypeStruct((1,), jnp.float32),
        grid=(num_tiles,),
        in_specs=[smem_spec] * 5 + [tile_spec, tile_spec],
        out_specs=pl.BlockSpec(memory_space=pltpu.MemorySpace.SMEM),
        scratch_shapes=[
            pltpu.VMEM((max_nbins, 128), jnp.float32),   # per-bin count partials
            pltpu.VMEM((max_nbins, 128), jnp.float32),   # per-bin sum(d) partials
            pltpu.VMEM((max_nbins, 128), jnp.float32),   # per-bin sum(d^2) partials
            pltpu.VMEM((1, 128), jnp.float32),           # squared-error partials
            pltpu.SMEM((1,), jnp.float32),               # running total loss
        ],
        compiler_params=pltpu.CompilerParams(
            dimension_semantics=("arbitrary",)),
    )(jnp.asarray(inv_alpha_meta, jnp.float32),
      jnp.asarray(qn_meta, jnp.int32),
      jnp.asarray(inv_n_meta, jnp.float32),
      jnp.asarray(first_meta, jnp.int32),
      jnp.asarray(last_meta, jnp.int32),
      w_all, wq_all)
    return jnp.float32(lmbda) * out[0]


def fake_get_quant_weight(weight, nbit, alpha):
    """Plain-JAX stand-in for QuantLinear/QuantConv2d.get_quant_weight()."""
    qn = -(2 ** (nbit - 1))
    qp = 2 ** (nbit - 1) - 1
    weight_fp_clip = jnp.clip(weight, qn * alpha, qp * alpha)
    weight_q = jnp.round(jnp.clip(weight / alpha, qn, qp)) * alpha
    return weight_q, weight_fp_clip, nbit, alpha


def bin_reg(layers, lmbda):
    """BinReg.forward: fused dampening loss over all quantized layers."""
    quant_layers = []
    for weight, nbit, alpha in layers:
        weight_q, weight_fp_clip, n, a = fake_get_quant_weight(weight, nbit, alpha)
        quant_layers.append((weight_fp_clip, weight_q, n, a))
    return binreg_loss_pallas(quant_layers, lmbda)


def _dampening_loss_ref_np(weight_fp_clip, weight_q, nbit, alpha):
    """float64 numpy reference mirroring the PyTorch code (for validation)."""
    w = np.asarray(weight_fp_clip, np.float64).reshape(-1)
    wq = np.asarray(weight_q, np.float64).reshape(-1)
    loss = np.mean((wq - w) ** 2)
    qn = -(2 ** (nbit - 1))
    qp = 2 ** (nbit - 1) - 1
    for b in range(qn, qp + 1):
        sel = w[(wq / alpha) == b]
        if sel.size > 1:
            loss += sel.var(ddof=1)
    return loss


if __name__ == "__main__":
    key = jax.random.PRNGKey(0)
    k1, k2, k3 = jax.random.split(key, 3)

    # Synthetic "model": one QuantLinear, one QuantConv2d, one QuantMultiHeadLinear.
    # alpha is a power of two so weight_q/alpha is an exact integer in f32,
    # matching the exact float equality test used by the PyTorch code.
    layers = [
        (0.5 * jax.random.normal(k1, (32, 16), jnp.float32), 4, 0.0625),      # QuantLinear
        (0.5 * jax.random.normal(k2, (4, 4, 3, 3), jnp.float32), 4, 0.0625),  # QuantConv2d (OIHW)
        (0.5 * jax.random.normal(k3, (2, 16, 16), jnp.float32), 3, 0.125),    # QuantMultiHeadLinear
    ]
    lmbda = 0.1

    loss = bin_reg(layers, lmbda)
    jax.block_until_ready(loss)

    # Cross-check against a float64 numpy reference of the torch semantics.
    ref = 0.0
    for weight, nbit, alpha in layers:
        weight_q, weight_fp_clip, n, a = fake_get_quant_weight(weight, nbit, alpha)
        ref += _dampening_loss_ref_np(weight_fp_clip, weight_q, n, a)
    ref *= lmbda
    np.testing.assert_allclose(float(loss), ref, rtol=1e-2, atol=1e-6)

    print("KERNEL_OK")
</pallas_src>

<mosaic_0001>
module attributes {stable_mosaic.version = 11 : i64} {
  func.func @_binreg_fused_kernel(%arg0: i32, %arg1: memref<3xf32, #tpu.memory_space<smem>>, %arg2: memref<3xi32, #tpu.memory_space<smem>>, %arg3: memref<3xf32, #tpu.memory_space<smem>>, %arg4: memref<3xi32, #tpu.memory_space<smem>>, %arg5: memref<3xi32, #tpu.memory_space<smem>>, %arg6: memref<8x128xf32, #tpu.memory_space<vmem>>, %arg7: memref<8x128xf32, #tpu.memory_space<vmem>>, %arg8: memref<1xf32, #tpu.memory_space<smem>>, %arg9: memref<16x128xf32, #tpu.memory_space<vmem>>, %arg10: memref<16x128xf32, #tpu.memory_space<vmem>>, %arg11: memref<16x128xf32, #tpu.memory_space<vmem>>, %arg12: memref<1x128xf32, #tpu.memory_space<vmem>>, %arg13: memref<1xf32, #tpu.memory_space<smem>>) attributes {dimension_semantics = [#tpu.dimension_semantics<arbitrary>], iteration_bounds = array<i64: 3>, scalar_prefetch = 0 : i64, scratch_operands = 5 : i64, tpu.core_type = #tpu.core_type<tc>, window_params = [{transform_indices = @transform_0, window_bounds = array<i64: 3>}, {transform_indices = @transform_1, window_bounds = array<i64: 3>}, {transform_indices = @transform_2, window_bounds = array<i64: 3>}, {transform_indices = @transform_3, window_bounds = array<i64: 3>}, {transform_indices = @transform_4, window_bounds = array<i64: 3>}, {transform_indices = @transform_5, window_bounds = array<i64: 8, 128>}, {transform_indices = @transform_6, window_bounds = array<i64: 8, 128>}, {transform_indices = @transform_7, window_bounds = array<i64: 1>}]} {
    %c0_i32 = arith.constant 0 : i32
    %0 = arith.cmpi eq, %arg0, %c0_i32 : i32
    %1 = arith.extui %0 : i1 to i32
    %c0_i32_0 = arith.constant 0 : i32
    %2 = arith.cmpi ne, %1, %c0_i32_0 : i32
    scf.if %2 {
      %cst_112 = arith.constant 0.000000e+00 : f32
      %c0_113 = arith.constant 0 : index
      %283 = memref.load %arg13[%c0_113] : memref<1xf32, #tpu.memory_space<smem>>
      memref.store %cst_112, %arg13[%c0_113] : memref<1xf32, #tpu.memory_space<smem>>
    } else {
    }
    %3 = arith.index_cast %arg0 : i32 to index
    %4 = memref.load %arg4[%3] : memref<3xi32, #tpu.memory_space<smem>>
    %c1_i32 = arith.constant 1 : i32
    %5 = arith.cmpi eq, %4, %c1_i32 : i32
    %6 = arith.extui %5 : i1 to i32
    %c0_i32_1 = arith.constant 0 : i32
    %7 = arith.cmpi ne, %6, %c0_i32_1 : i32
    scf.if %7 {
      %cst_112 = arith.constant 0.000000e+00 : f32
      %283 = vector.broadcast %cst_112 : f32 to vector<16x128xf32>
      %c0_113 = arith.constant 0 : index
      %c0_114 = arith.constant 0 : index
      %284 = vector.load %arg9[%c0_113, %c0_114] : memref<16x128xf32, #tpu.memory_space<vmem>>, vector<16x128xf32>
      tpu.vector_store %arg9[%c0_113, %c0_114], %283 {strides = array<i32>} : memref<16x128xf32, #tpu.memory_space<vmem>>, vector<16x128xf32>,
      %cst_115 = arith.constant 0.000000e+00 : f32
      %285 = vector.broadcast %cst_115 : f32 to vector<16x128xf32>
      %c0_116 = arith.constant 0 : index
      %c0_117 = arith.constant 0 : index
      %286 = vector.load %arg10[%c0_116, %c0_117] : memref<16x128xf32, #tpu.memory_space<vmem>>, vector<16x128xf32>
      tpu.vector_store %arg10[%c0_116, %c0_117], %285 {strides = array<i32>} : memref<16x128xf32, #tpu.memory_space<vmem>>, vector<16x128xf32>,
      %cst_118 = arith.constant 0.000000e+00 : f32
      %287 = vector.broadcast %cst_118 : f32 to vector<16x128xf32>
      %c0_119 = arith.constant 0 : index
      %c0_120 = arith.constant 0 : index
      %288 = vector.load %arg11[%c0_119, %c0_120] : memref<16x128xf32, #tpu.memory_space<vmem>>, vector<16x128xf32>
      tpu.vector_store %arg11[%c0_119, %c0_120], %287 {strides = array<i32>} : memref<16x128xf32, #tpu.memory_space<vmem>>, vector<16x128xf32>,
      %cst_121 = arith.constant 0.000000e+00 : f32
      %289 = vector.broadcast %cst_121 : f32 to vector<1x128xf32>
      %c0_122 = arith.constant 0 : index
      %c0_123 = arith.constant 0 : index
      %290 = vector.load %arg12[%c0_122, %c0_123] : memref<1x128xf32, #tpu.memory_space<vmem>>, vector<1x128xf32>
      tpu.vector_store %arg12[%c0_122, %c0_123], %289 {strides = array<i32>} : memref<1x128xf32, #tpu.memory_space<vmem>>, vector<1x128xf32>,
    } else {
    }
    %8 = arith.index_cast %arg0 : i32 to index
    %9 = memref.load %arg1[%8] : memref<3xf32, #tpu.memory_space<smem>>
    %10 = arith.index_cast %arg0 : i32 to index
    %11 = memref.load %arg2[%10] : memref<3xi32, #tpu.memory_space<smem>>
    %cst = arith.constant 0.000000e+00 : f32
    %12 = vector.broadcast %cst : f32 to vector<16x128xf32>
    %cst_2 = arith.constant 0.000000e+00 : f32
    %13 = vector.broadcast %cst_2 : f32 to vector<16x128xf32>
    %cst_3 = arith.constant 0.000000e+00 : f32
    %14 = vector.broadcast %cst_3 : f32 to vector<16x128xf32>
    %cst_4 = arith.constant 0.000000e+00 : f32
    %15 = vector.broadcast %cst_4 : f32 to vector<1x128xf32>
    %c0_i32_5 = arith.constant 0 : i32
    %c8_i32 = arith.constant 8 : i32
    %16 = arith.muli %c0_i32_5, %c8_i32 : i32
    %17 = tpu.assume_multiple %16, 8 : i32
    %18 = arith.index_cast %17 : i32 to index
    %c0 = arith.constant 0 : index
    %19 = vector.load %arg6[%18, %c0] : memref<8x128xf32, #tpu.memory_space<vmem>>, vector<8x128xf32>
    %20 = arith.index_cast %17 : i32 to index
    %c0_6 = arith.constant 0 : index
    %21 = vector.load %arg7[%20, %c0_6] : memref<8x128xf32, #tpu.memory_space<vmem>>, vector<8x128xf32>
    %22 = arith.subf %19, %21 : vector<8x128xf32>
    %23 = arith.mulf %22, %22 : vector<8x128xf32>
    %cst_7 = arith.constant dense<0.000000e+00> : vector<128xf32>
    %24 = vector.multi_reduction <add>, %23, %cst_7 [0] : vector<8x128xf32> to vector<128xf32>
    %25 = vector.shape_cast %24 : vector<128xf32> to vector<1x128xf32>
    %26 = arith.addf %15, %25 : vector<1x128xf32>
    %27 = vector.broadcast %9 : f32 to vector<8x128xf32>
    %28 = arith.mulf %21, %27 : vector<8x128xf32>
    %29 = math.roundeven %28 : vector<8x128xf32>
    %30 = arith.fptosi %29 : vector<8x128xf32> to vector<8x128xi32>
    %31 = vector.broadcast %11 : i32 to vector<8x128xi32>
    %32 = arith.subi %30, %31 : vector<8x128xi32>
    %c0_i32_8 = arith.constant 0 : i32
    %33 = vector.broadcast %c0_i32_8 : i32 to vector<8x128xi32>
    %34 = arith.cmpi eq, %32, %33 : vector<8x128xi32>
    %35 = arith.extui %34 : vector<8x128xi1> to vector<8x128xi32>
    %36 = arith.sitofp %35 : vector<8x128xi32> to vector<8x128xf32>
    %cst_9 = arith.constant dense<0.000000e+00> : vector<128xf32>
    %37 = vector.multi_reduction <add>, %36, %cst_9 [0] : vector<8x128xf32> to vector<128xf32>
    %38 = vector.shape_cast %37 : vector<128xf32> to vector<1x128xf32>
    %cst_10 = arith.constant 0.000000e+00 : f32
    %39 = vector.broadcast %cst_10 : f32 to vector<8x128xf32>
    %40 = arith.select %34, %22, %39 : vector<8x128xi1>, vector<8x128xf32>
    %cst_11 = arith.constant dense<0.000000e+00> : vector<128xf32>
    %41 = vector.multi_reduction <add>, %40, %cst_11 [0] : vector<8x128xf32> to vector<128xf32>
    %42 = vector.shape_cast %41 : vector<128xf32> to vector<1x128xf32>
    %cst_12 = arith.constant 0.000000e+00 : f32
    %43 = vector.broadcast %cst_12 : f32 to vector<8x128xf32>
    %44 = arith.select %34, %23, %43 : vector<8x128xi1>, vector<8x128xf32>
    %cst_13 = arith.constant dense<0.000000e+00> : vector<128xf32>
    %45 = vector.multi_reduction <add>, %44, %cst_13 [0] : vector<8x128xf32> to vector<128xf32>
    %46 = vector.shape_cast %45 : vector<128xf32> to vector<1x128xf32>
    %c1_i32_14 = arith.constant 1 : i32
    %47 = vector.broadcast %c1_i32_14 : i32 to vector<8x128xi32>
    %48 = arith.cmpi eq, %32, %47 : vector<8x128xi32>
    %49 = arith.extui %48 : vector<8x128xi1> to vector<8x128xi32>
    %50 = arith.sitofp %49 : vector<8x128xi32> to vector<8x128xf32>
    %cst_15 = arith.constant dense<0.000000e+00> : vector<128xf32>
    %51 = vector.multi_reduction <add>, %50, %cst_15 [0] : vector<8x128xf32> to vector<128xf32>
    %52 = vector.shape_cast %51 : vector<128xf32> to vector<1x128xf32>
    %cst_16 = arith.constant 0.000000e+00 : f32
    %53 = vector.broadcast %cst_16 : f32 to vector<8x128xf32>
    %54 = arith.select %48, %22, %53 : vector<8x128xi1>, vector<8x128xf32>
    %cst_17 = arith.constant dense<0.000000e+00> : vector<128xf32>
    %55 = vector.multi_reduction <add>, %54, %cst_17 [0] : vector<8x128xf32> to vector<128xf32>
    %56 = vector.shape_cast %55 : vector<128xf32> to vector<1x128xf32>
    %cst_18 = arith.constant 0.000000e+00 : f32
    %57 = vector.broadcast %cst_18 : f32 to vector<8x128xf32>
    %58 = arith.select %48, %23, %57 : vector<8x128xi1>, vector<8x128xf32>
    %cst_19 = arith.constant dense<0.000000e+00> : vector<128xf32>
    %59 = vector.multi_reduction <add>, %58, %cst_19 [0] : vector<8x128xf32> to vector<128xf32>
    %60 = vector.shape_cast %59 : vector<128xf32> to vector<1x128xf32>
    %c2_i32 = arith.constant 2 : i32
    %61 = vector.broadcast %c2_i32 : i32 to vector<8x128xi32>
    %62 = arith.cmpi eq, %32, %61 : vector<8x128xi32>
    %63 = arith.extui %62 : vector<8x128xi1> to vector<8x128xi32>
    %64 = arith.sitofp %63 : vector<8x128xi32> to vector<8x128xf32>
    %cst_20 = arith.constant dense<0.000000e+00> : vector<128xf32>
    %65 = vector.multi_reduction <add>, %64, %cst_20 [0] : vector<8x128xf32> to vector<128xf32>
    %66 = vector.shape_cast %65 : vector<128xf32> to vector<1x128xf32>
    %cst_21 = arith.constant 0.000000e+00 : f32
    %67 = vector.broadcast %cst_21 : f32 to vector<8x128xf32>
    %68 = arith.select %62, %22, %67 : vector<8x128xi1>, vector<8x128xf32>
    %cst_22 = arith.constant dense<0.000000e+00> : vector<128xf32>
    %69 = vector.multi_reduction <add>, %68, %cst_22 [0] : vector<8x128xf32> to vector<128xf32>
    %70 = vector.shape_cast %69 : vector<128xf32> to vector<1x128xf32>
    %cst_23 = arith.constant 0.000000e+00 : f32
    %71 = vector.broadcast %cst_23 : f32 to vector<8x128xf32>
    %72 = arith.select %62, %23, %71 : vector<8x128xi1>, vector<8x128xf32>
    %cst_24 = arith.constant dense<0.000000e+00> : vector<128xf32>
    %73 = vector.multi_reduction <add>, %72, %cst_24 [0] : vector<8x128xf32> to vector<128xf32>
    %74 = vector.shape_cast %73 : vector<128xf32> to vector<1x128xf32>
    %c3_i32 = arith.constant 3 : i32
    %75 = vector.broadcast %c3_i32 : i32 to vector<8x128xi32>
    %76 = arith.cmpi eq, %32, %75 : vector<8x128xi32>
    %77 = arith.extui %76 : vector<8x128xi1> to vector<8x128xi32>
    %78 = arith.sitofp %77 : vector<8x128xi32> to vector<8x128xf32>
    %cst_25 = arith.constant dense<0.000000e+00> : vector<128xf32>
    %79 = vector.multi_reduction <add>, %78, %cst_25 [0] : vector<8x128xf32> to vector<128xf32>
    %80 = vector.shape_cast %79 : vector<128xf32> to vector<1x128xf32>
    %cst_26 = arith.constant 0.000000e+00 : f32
    %81 = vector.broadcast %cst_26 : f32 to vector<8x128xf32>
    %82 = arith.select %76, %22, %81 : vector<8x128xi1>, vector<8x128xf32>
    %cst_27 = arith.constant dense<0.000000e+00> : vector<128xf32>
    %83 = vector.multi_reduction <add>, %82, %cst_27 [0] : vector<8x128xf32> to vector<128xf32>
    %84 = vector.shape_cast %83 : vector<128xf32> to vector<1x128xf32>
    %cst_28 = arith.constant 0.000000e+00 : f32
    %85 = vector.broadcast %cst_28 : f32 to vector<8x128xf32>
    %86 = arith.select %76, %23, %85 : vector<8x128xi1>, vector<8x128xf32>
    %cst_29 = arith.constant dense<0.000000e+00> : vector<128xf32>
    %87 = vector.multi_reduction <add>, %86, %cst_29 [0] : vector<8x128xf32> to vector<128xf32>
    %88 = vector.shape_cast %87 : vector<128xf32> to vector<1x128xf32>
    %c4_i32 = arith.constant 4 : i32
    %89 = vector.broadcast %c4_i32 : i32 to vector<8x128xi32>
    %90 = arith.cmpi eq, %32, %89 : vector<8x128xi32>
    %91 = arith.extui %90 : vector<8x128xi1> to vector<8x128xi32>
    %92 = arith.sitofp %91 : vector<8x128xi32> to vector<8x128xf32>
    %cst_30 = arith.constant dense<0.000000e+00> : vector<128xf32>
    %93 = vector.multi_reduction <add>, %92, %cst_30 [0] : vector<8x128xf32> to vector<128xf32>
    %94 = vector.shape_cast %93 : vector<128xf32> to vector<1x128xf32>
    %cst_31 = arith.constant 0.000000e+00 : f32
    %95 = vector.broadcast %cst_31 : f32 to vector<8x128xf32>
    %96 = arith.select %90, %22, %95 : vector<8x128xi1>, vector<8x128xf32>
    %cst_32 = arith.constant dense<0.000000e+00> : vector<128xf32>
    %97 = vector.multi_reduction <add>, %96, %cst_32 [0] : vector<8x128xf32> to vector<128xf32>
    %98 = vector.shape_cast %97 : vector<128xf32> to vector<1x128xf32>
    %cst_33 = arith.constant 0.000000e+00 : f32
    %99 = vector.broadcast %cst_33 : f32 to vector<8x128xf32>
    %100 = arith.select %90, %23, %99 : vector<8x128xi1>, vector<8x128xf32>
    %cst_34 = arith.constant dense<0.000000e+00> : vector<128xf32>
    %101 = vector.multi_reduction <add>, %100, %cst_34 [0] : vector<8x128xf32> to vector<128xf32>
    %102 = vector.shape_cast %101 : vector<128xf32> to vector<1x128xf32>
    %c5_i32 = arith.constant 5 : i32
    %103 = vector.broadcast %c5_i32 : i32 to vector<8x128xi32>
    %104 = arith.cmpi eq, %32, %103 : vector<8x128xi32>
    %105 = arith.extui %104 : vector<8x128xi1> to vector<8x128xi32>
    %106 = arith.sitofp %105 : vector<8x128xi32> to vector<8x128xf32>
    %cst_35 = arith.constant dense<0.000000e+00> : vector<128xf32>
    %107 = vector.multi_reduction <add>, %106, %cst_35 [0] : vector<8x128xf32> to vector<128xf32>
    %108 = vector.shape_cast %107 : vector<128xf32> to vector<1x128xf32>
    %cst_36 = arith.constant 0.000000e+00 : f32
    %109 = vector.broadcast %cst_36 : f32 to vector<8x128xf32>
    %110 = arith.select %104, %22, %109 : vector<8x128xi1>, vector<8x128xf32>
    %cst_37 = arith.constant dense<0.000000e+00> : vector<128xf32>
    %111 = vector.multi_reduction <add>, %110, %cst_37 [0] : vector<8x128xf32> to vector<128xf32>
    %112 = vector.shape_cast %111 : vector<128xf32> to vector<1x128xf32>
    %cst_38 = arith.constant 0.000000e+00 : f32
    %113 = vector.broadcast %cst_38 : f32 to vector<8x128xf32>
    %114 = arith.select %104, %23, %113 : vector<8x128xi1>, vector<8x128xf32>
    %cst_39 = arith.constant dense<0.000000e+00> : vector<128xf32>
    %115 = vector.multi_reduction <add>, %114, %cst_39 [0] : vector<8x128xf32> to vector<128xf32>
    %116 = vector.shape_cast %115 : vector<128xf32> to vector<1x128xf32>
    %c6_i32 = arith.constant 6 : i32
    %117 = vector.broadcast %c6_i32 : i32 to vector<8x128xi32>
    %118 = arith.cmpi eq, %32, %117 : vector<8x128xi32>
    %119 = arith.extui %118 : vector<8x128xi1> to vector<8x128xi32>
    %120 = arith.sitofp %119 : vector<8x128xi32> to vector<8x128xf32>
    %cst_40 = arith.constant dense<0.000000e+00> : vector<128xf32>
    %121 = vector.multi_reduction <add>, %120, %cst_40 [0] : vector<8x128xf32> to vector<128xf32>
    %122 = vector.shape_cast %121 : vector<128xf32> to vector<1x128xf32>
    %cst_41 = arith.constant 0.000000e+00 : f32
    %123 = vector.broadcast %cst_41 : f32 to vector<8x128xf32>
    %124 = arith.select %118, %22, %123 : vector<8x128xi1>, vector<8x128xf32>
    %cst_42 = arith.constant dense<0.000000e+00> : vector<128xf32>
    %125 = vector.multi_reduction <add>, %124, %cst_42 [0] : vector<8x128xf32> to vector<128xf32>
    %126 = vector.shape_cast %125 : vector<128xf32> to vector<1x128xf32>
    %cst_43 = arith.constant 0.000000e+00 : f32
    %127 = vector.broadcast %cst_43 : f32 to vector<8x128xf32>
    %128 = arith.select %118, %23, %127 : vector<8x128xi1>, vector<8x128xf32>
    %cst_44 = arith.constant dense<0.000000e+00> : vector<128xf32>
    %129 = vector.multi_reduction <add>, %128, %cst_44 [0] : vector<8x128xf32> to vector<128xf32>
    %130 = vector.shape_cast %129 : vector<128xf32> to vector<1x128xf32>
    %c7_i32 = arith.constant 7 : i32
    %131 = vector.broadcast %c7_i32 : i32 to vector<8x128xi32>
    %132 = arith.cmpi eq, %32, %131 : vector<8x128xi32>
    %133 = arith.extui %132 : vector<8x128xi1> to vector<8x128xi32>
    %134 = arith.sitofp %133 : vector<8x128xi32> to vector<8x128xf32>
    %cst_45 = arith.constant dense<0.000000e+00> : vector<128xf32>
    %135 = vector.multi_reduction <add>, %134, %cst_45 [0] : vector<8x128xf32> to vector<128xf32>
    %136 = vector.shape_cast %135 : vector<128xf32> to vector<1x128xf32>
    %cst_46 = arith.constant 0.000000e+00 : f32
    %137 = vector.broadcast %cst_46 : f32 to vector<8x128xf32>
    %138 = arith.select %132, %22, %137 : vector<8x128xi1>, vector<8x128xf32>
    %cst_47 = arith.constant dense<0.000000e+00> : vector<128xf32>
    %139 = vector.multi_reduction <add>, %138, %cst_47 [0] : vector<8x128xf32> to vector<128xf32>
    %140 = vector.shape_cast %139 : vector<128xf32> to vector<1x128xf32>
    %cst_48 = arith.constant 0.000000e+00 : f32
    %141 = vector.broadcast %cst_48 : f32 to vector<8x128xf32>
    %142 = arith.select %132, %23, %141 : vector<8x128xi1>, vector<8x128xf32>
    %cst_49 = arith.constant dense<0.000000e+00> : vector<128xf32>
    %143 = vector.multi_reduction <add>, %142, %cst_49 [0] : vector<8x128xf32> to vector<128xf32>
    %144 = vector.shape_cast %143 : vector<128xf32> to vector<1x128xf32>
    %c8_i32_50 = arith.constant 8 : i32
    %145 = vector.broadcast %c8_i32_50 : i32 to vector<8x128xi32>
    %146 = arith.cmpi eq, %32, %145 : vector<8x128xi32>
    %147 = arith.extui %146 : vector<8x128xi1> to vector<8x128xi32>
    %148 = arith.sitofp %147 : vector<8x128xi32> to vector<8x128xf32>
    %cst_51 = arith.constant dense<0.000000e+00> : vector<128xf32>
    %149 = vector.multi_reduction <add>, %148, %cst_51 [0] : vector<8x128xf32> to vector<128xf32>
    %150 = vector.shape_cast %149 : vector<128xf32> to vector<1x128xf32>
    %cst_52 = arith.constant 0.000000e+00 : f32
    %151 = vector.broadcast %cst_52 : f32 to vector<8x128xf32>
    %152 = arith.select %146, %22, %151 : vector<8x128xi1>, vector<8x128xf32>
    %cst_53 = arith.constant dense<0.000000e+00> : vector<128xf32>
    %153 = vector.multi_reduction <add>, %152, %cst_53 [0] : vector<8x128xf32> to vector<128xf32>
    %154 = vector.shape_cast %153 : vector<128xf32> to vector<1x128xf32>
    %cst_54 = arith.constant 0.000000e+00 : f32
    %155 = vector.broadcast %cst_54 : f32 to vector<8x128xf32>
    %156 = arith.select %146, %23, %155 : vector<8x128xi1>, vector<8x128xf32>
    %cst_55 = arith.constant dense<0.000000e+00> : vector<128xf32>
    %157 = vector.multi_reduction <add>, %156, %cst_55 [0] : vector<8x128xf32> to vector<128xf32>
    %158 = vector.shape_cast %157 : vector<128xf32> to vector<1x128xf32>
    %c9_i32 = arith.constant 9 : i32
    %159 = vector.broadcast %c9_i32 : i32 to vector<8x128xi32>
    %160 = arith.cmpi eq, %32, %159 : vector<8x128xi32>
    %161 = arith.extui %160 : vector<8x128xi1> to vector<8x128xi32>
    %162 = arith.sitofp %161 : vector<8x128xi32> to vector<8x128xf32>
    %cst_56 = arith.constant dense<0.000000e+00> : vector<128xf32>
    %163 = vector.multi_reduction <add>, %162, %cst_56 [0] : vector<8x128xf32> to vector<128xf32>
    %164 = vector.shape_cast %163 : vector<128xf32> to vector<1x128xf32>
    %cst_57 = arith.constant 0.000000e+00 : f32
    %165 = vector.broadcast %cst_57 : f32 to vector<8x128xf32>
    %166 = arith.select %160, %22, %165 : vector<8x128xi1>, vector<8x128xf32>
    %cst_58 = arith.constant dense<0.000000e+00> : vector<128xf32>
    %167 = vector.multi_reduction <add>, %166, %cst_58 [0] : vector<8x128xf32> to vector<128xf32>
    %168 = vector.shape_cast %167 : vector<128xf32> to vector<1x128xf32>
    %cst_59 = arith.constant 0.000000e+00 : f32
    %169 = vector.broadcast %cst_59 : f32 to vector<8x128xf32>
    %170 = arith.select %160, %23, %169 : vector<8x128xi1>, vector<8x128xf32>
    %cst_60 = arith.constant dense<0.000000e+00> : vector<128xf32>
    %171 = vector.multi_reduction <add>, %170, %cst_60 [0] : vector<8x128xf32> to vector<128xf32>
    %172 = vector.shape_cast %171 : vector<128xf32> to vector<1x128xf32>
    %c10_i32 = arith.constant 10 : i32
    %173 = vector.broadcast %c10_i32 : i32 to vector<8x128xi32>
    %174 = arith.cmpi eq, %32, %173 : vector<8x128xi32>
    %175 = arith.extui %174 : vector<8x128xi1> to vector<8x128xi32>
    %176 = arith.sitofp %175 : vector<8x128xi32> to vector<8x128xf32>
    %cst_61 = arith.constant dense<0.000000e+00> : vector<128xf32>
    %177 = vector.multi_reduction <add>, %176, %cst_61 [0] : vector<8x128xf32> to vector<128xf32>
    %178 = vector.shape_cast %177 : vector<128xf32> to vector<1x128xf32>
    %cst_62 = arith.constant 0.000000e+00 : f32
    %179 = vector.broadcast %cst_62 : f32 to vector<8x128xf32>
    %180 = arith.select %174, %22, %179 : vector<8x128xi1>, vector<8x128xf32>
    %cst_63 = arith.constant dense<0.000000e+00> : vector<128xf32>
    %181 = vector.multi_reduction <add>, %180, %cst_63 [0] : vector<8x128xf32> to vector<128xf32>
    %182 = vector.shape_cast %181 : vector<128xf32> to vector<1x128xf32>
    %cst_64 = arith.constant 0.000000e+00 : f32
    %183 = vector.broadcast %cst_64 : f32 to vector<8x128xf32>
    %184 = arith.select %174, %23, %183 : vector<8x128xi1>, vector<8x128xf32>
    %cst_65 = arith.constant dense<0.000000e+00> : vector<128xf32>
    %185 = vector.multi_reduction <add>, %184, %cst_65 [0] : vector<8x128xf32> to vector<128xf32>
    %186 = vector.shape_cast %185 : vector<128xf32> to vector<1x128xf32>
    %c11_i32 = arith.constant 11 : i32
    %187 = vector.broadcast %c11_i32 : i32 to vector<8x128xi32>
    %188 = arith.cmpi eq, %32, %187 : vector<8x128xi32>
    %189 = arith.extui %188 : vector<8x128xi1> to vector<8x128xi32>
    %190 = arith.sitofp %189 : vector<8x128xi32> to vector<8x128xf32>
    %cst_66 = arith.constant dense<0.000000e+00> : vector<128xf32>
    %191 = vector.multi_reduction <add>, %190, %cst_66 [0] : vector<8x128xf32> to vector<128xf32>
    %192 = vector.shape_cast %191 : vector<128xf32> to vector<1x128xf32>
    %cst_67 = arith.constant 0.000000e+00 : f32
    %193 = vector.broadcast %cst_67 : f32 to vector<8x128xf32>
    %194 = arith.select %188, %22, %193 : vector<8x128xi1>, vector<8x128xf32>
    %cst_68 = arith.constant dense<0.000000e+00> : vector<128xf32>
    %195 = vector.multi_reduction <add>, %194, %cst_68 [0] : vector<8x128xf32> to vector<128xf32>
    %196 = vector.shape_cast %195 : vector<128xf32> to vector<1x128xf32>
    %cst_69 = arith.constant 0.000000e+00 : f32
    %197 = vector.broadcast %cst_69 : f32 to vector<8x128xf32>
    %198 = arith.select %188, %23, %197 : vector<8x128xi1>, vector<8x128xf32>
    %cst_70 = arith.constant dense<0.000000e+00> : vector<128xf32>
    %199 = vector.multi_reduction <add>, %198, %cst_70 [0] : vector<8x128xf32> to vector<128xf32>
    %200 = vector.shape_cast %199 : vector<128xf32> to vector<1x128xf32>
    %c12_i32 = arith.constant 12 : i32
    %201 = vector.broadcast %c12_i32 : i32 to vector<8x128xi32>
    %202 = arith.cmpi eq, %32, %201 : vector<8x128xi32>
    %203 = arith.extui %202 : vector<8x128xi1> to vector<8x128xi32>
    %204 = arith.sitofp %203 : vector<8x128xi32> to vector<8x128xf32>
    %cst_71 = arith.constant dense<0.000000e+00> : vector<128xf32>
    %205 = vector.multi_reduction <add>, %204, %cst_71 [0] : vector<8x128xf32> to vector<128xf32>
    %206 = vector.shape_cast %205 : vector<128xf32> to vector<1x128xf32>
    %cst_72 = arith.constant 0.000000e+00 : f32
    %207 = vector.broadcast %cst_72 : f32 to vector<8x128xf32>
    %208 = arith.select %202, %22, %207 : vector<8x128xi1>, vector<8x128xf32>
    %cst_73 = arith.constant dense<0.000000e+00> : vector<128xf32>
    %209 = vector.multi_reduction <add>, %208, %cst_73 [0] : vector<8x128xf32> to vector<128xf32>
    %210 = vector.shape_cast %209 : vector<128xf32> to vector<1x128xf32>
    %cst_74 = arith.constant 0.000000e+00 : f32
    %211 = vector.broadcast %cst_74 : f32 to vector<8x128xf32>
    %212 = arith.select %202, %23, %211 : vector<8x128xi1>, vector<8x128xf32>
    %cst_75 = arith.constant dense<0.000000e+00> : vector<128xf32>
    %213 = vector.multi_reduction <add>, %212, %cst_75 [0] : vector<8x128xf32> to vector<128xf32>
    %214 = vector.shape_cast %213 : vector<128xf32> to vector<1x128xf32>
    %c13_i32 = arith.constant 13 : i32
    %215 = vector.broadcast %c13_i32 : i32 to vector<8x128xi32>
    %216 = arith.cmpi eq, %32, %215 : vector<8x128xi32>
    %217 = arith.extui %216 : vector<8x128xi1> to vector<8x128xi32>
    %218 = arith.sitofp %217 : vector<8x128xi32> to vector<8x128xf32>
    %cst_76 = arith.constant dense<0.000000e+00> : vector<128xf32>
    %219 = vector.multi_reduction <add>, %218, %cst_76 [0] : vector<8x128xf32> to vector<128xf32>
    %220 = vector.shape_cast %219 : vector<128xf32> to vector<1x128xf32>
    %cst_77 = arith.constant 0.000000e+00 : f32
    %221 = vector.broadcast %cst_77 : f32 to vector<8x128xf32>
    %222 = arith.select %216, %22, %221 : vector<8x128xi1>, vector<8x128xf32>
    %cst_78 = arith.constant dense<0.000000e+00> : vector<128xf32>
    %223 = vector.multi_reduction <add>, %222, %cst_78 [0] : vector<8x128xf32> to vector<128xf32>
    %224 = vector.shape_cast %223 : vector<128xf32> to vector<1x128xf32>
    %cst_79 = arith.constant 0.000000e+00 : f32
    %225 = vector.broadcast %cst_79 : f32 to vector<8x128xf32>
    %226 = arith.select %216, %23, %225 : vector<8x128xi1>, vector<8x128xf32>
    %cst_80 = arith.constant dense<0.000000e+00> : vector<128xf32>
    %227 = vector.multi_reduction <add>, %226, %cst_80 [0] : vector<8x128xf32> to vector<128xf32>
    %228 = vector.shape_cast %227 : vector<128xf32> to vector<1x128xf32>
    %c14_i32 = arith.constant 14 : i32
    %229 = vector.broadcast %c14_i32 : i32 to vector<8x128xi32>
    %230 = arith.cmpi eq, %32, %229 : vector<8x128xi32>
    %231 = arith.extui %230 : vector<8x128xi1> to vector<8x128xi32>
    %232 = arith.sitofp %231 : vector<8x128xi32> to vector<8x128xf32>
    %cst_81 = arith.constant dense<0.000000e+00> : vector<128xf32>
    %233 = vector.multi_reduction <add>, %232, %cst_81 [0] : vector<8x128xf32> to vector<128xf32>
    %234 = vector.shape_cast %233 : vector<128xf32> to vector<1x128xf32>
    %cst_82 = arith.constant 0.000000e+00 : f32
    %235 = vector.broadcast %cst_82 : f32 to vector<8x128xf32>
    %236 = arith.select %230, %22, %235 : vector<8x128xi1>, vector<8x128xf32>
    %cst_83 = arith.constant dense<0.000000e+00> : vector<128xf32>
    %237 = vector.multi_reduction <add>, %236, %cst_83 [0] : vector<8x128xf32> to vector<128xf32>
    %238 = vector.shape_cast %237 : vector<128xf32> to vector<1x128xf32>
    %cst_84 = arith.constant 0.000000e+00 : f32
    %239 = vector.broadcast %cst_84 : f32 to vector<8x128xf32>
    %240 = arith.select %230, %23, %239 : vector<8x128xi1>, vector<8x128xf32>
    %cst_85 = arith.constant dense<0.000000e+00> : vector<128xf32>
    %241 = vector.multi_reduction <add>, %240, %cst_85 [0] : vector<8x128xf32> to vector<128xf32>
    %242 = vector.shape_cast %241 : vector<128xf32> to vector<1x128xf32>
    %c15_i32 = arith.constant 15 : i32
    %243 = vector.broadcast %c15_i32 : i32 to vector<8x128xi32>
    %244 = arith.cmpi eq, %32, %243 : vector<8x128xi32>
    %245 = arith.extui %244 : vector<8x128xi1> to vector<8x128xi32>
    %246 = arith.sitofp %245 : vector<8x128xi32> to vector<8x128xf32>
    %cst_86 = arith.constant dense<0.000000e+00> : vector<128xf32>
    %247 = vector.multi_reduction <add>, %246, %cst_86 [0] : vector<8x128xf32> to vector<128xf32>
    %248 = vector.shape_cast %247 : vector<128xf32> to vector<1x128xf32>
    %cst_87 = arith.constant 0.000000e+00 : f32
    %249 = vector.broadcast %cst_87 : f32 to vector<8x128xf32>
    %250 = arith.select %244, %22, %249 : vector<8x128xi1>, vector<8x128xf32>
    %cst_88 = arith.constant dense<0.000000e+00> : vector<128xf32>
    %251 = vector.multi_reduction <add>, %250, %cst_88 [0] : vector<8x128xf32> to vector<128xf32>
    %252 = vector.shape_cast %251 : vector<128xf32> to vector<1x128xf32>
    %cst_89 = arith.constant 0.000000e+00 : f32
    %253 = vector.broadcast %cst_89 : f32 to vector<8x128xf32>
    %254 = arith.select %244, %23, %253 : vector<8x128xi1>, vector<8x128xf32>
    %cst_90 = arith.constant dense<0.000000e+00> : vector<128xf32>
    %255 = vector.multi_reduction <add>, %254, %cst_90 [0] : vector<8x128xf32> to vector<128xf32>
    %256 = vector.shape_cast %255 : vector<128xf32> to vector<1x128xf32>
    %257 = tpu.concatenate %38, %52, %66, %80, %94, %108, %122, %136, %150, %164, %178, %192, %206, %220, %234, %248 in 0 : vector<1x128xf32>, vector<1x128xf32>, vector<1x128xf32>, vector<1x128xf32>, vector<1x128xf32>, vector<1x128xf32>, vector<1x128xf32>, vector<1x128xf32>, vector<1x128xf32>, vector<1x128xf32>, vector<1x128xf32>, vector<1x128xf32>, vector<1x128xf32>, vector<1x128xf32>, vector<1x128xf32>, vector<1x128xf32> -> vector<16x128xf32>
    %258 = arith.addf %12, %257 : vector<16x128xf32>
    %259 = tpu.concatenate %42, %56, %70, %84, %98, %112, %126, %140, %154, %168, %182, %196, %210, %224, %238, %252 in 0 : vector<1x128xf32>, vector<1x128xf32>, vector<1x128xf32>, vector<1x128xf32>, vector<1x128xf32>, vector<1x128xf32>, vector<1x128xf32>, vector<1x128xf32>, vector<1x128xf32>, vector<1x128xf32>, vector<1x128xf32>, vector<1x128xf32>, vector<1x128xf32>, vector<1x128xf32>, vector<1x128xf32>, vector<1x128xf32> -> vector<16x128xf32>
    %260 = arith.addf %13, %259 : vector<16x128xf32>
    %261 = tpu.concatenate %46, %60, %74, %88, %102, %116, %130, %144, %158, %172, %186, %200, %214, %228, %242, %256 in 0 : vector<1x128xf32>, vector<1x128xf32>, vector<1x128xf32>, vector<1x128xf32>, vector<1x128xf32>, vector<1x128xf32>, vector<1x128xf32>, vector<1x128xf32>, vector<1x128xf32>, vector<1x128xf32>, vector<1x128xf32>, vector<1x128xf32>, vector<1x128xf32>, vector<1x128xf32>, vector<1x128xf32>, vector<1x128xf32> -> vector<16x128xf32>
    %262 = arith.addf %14, %261 : vector<16x128xf32>
    %c1_i32_91 = arith.constant 1 : i32
    %c0_92 = arith.constant 0 : index
    %c0_93 = arith.constant 0 : index
    %263 = vector.load %arg9[%c0_92, %c0_93] : memref<16x128xf32, #tpu.memory_space<vmem>>, vector<16x128xf32>
    %264 = arith.addf %263, %258 : vector<16x128xf32>
    %c0_94 = arith.constant 0 : index
    %c0_95 = arith.constant 0 : index
    %265 = vector.load %arg9[%c0_94, %c0_95] : memref<16x128xf32, #tpu.memory_space<vmem>>, vector<16x128xf32>
    tpu.vector_store %arg9[%c0_94, %c0_95], %264 {strides = array<i32>} : memref<16x128xf32, #tpu.memory_space<vmem>>, vector<16x128xf32>,
    %c0_96 = arith.constant 0 : index
    %c0_97 = arith.constant 0 : index
    %266 = vector.load %arg10[%c0_96, %c0_97] : memref<16x128xf32, #tpu.memory_space<vmem>>, vector<16x128xf32>
    %267 = arith.addf %266, %260 : vector<16x128xf32>
    %c0_98 = arith.constant 0 : index
    %c0_99 = arith.constant 0 : index
    %268 = vector.load %arg10[%c0_98, %c0_99] : memref<16x128xf32, #tpu.memory_space<vmem>>, vector<16x128xf32>
    tpu.vector_store %arg10[%c0_98, %c0_99], %267 {strides = array<i32>} : memref<16x128xf32, #tpu.memory_space<vmem>>, vector<16x128xf32>,
    %c0_100 = arith.constant 0 : index
    %c0_101 = arith.constant 0 : index
    %269 = vector.load %arg11[%c0_100, %c0_101] : memref<16x128xf32, #tpu.memory_space<vmem>>, vector<16x128xf32>
    %270 = arith.addf %269, %262 : vector<16x128xf32>
    %c0_102 = arith.constant 0 : index
    %c0_103 = arith.constant 0 : index
    %271 = vector.load %arg11[%c0_102, %c0_103] : memref<16x128xf32, #tpu.memory_space<vmem>>, vector<16x128xf32>
    tpu.vector_store %arg11[%c0_102, %c0_103], %270 {strides = array<i32>} : memref<16x128xf32, #tpu.memory_space<vmem>>, vector<16x128xf32>,
    %c0_104 = arith.constant 0 : index
    %c0_105 = arith.constant 0 : index
    %272 = vector.load %arg12[%c0_104, %c0_105] : memref<1x128xf32, #tpu.memory_space<vmem>>, vector<1x128xf32>
    %273 = arith.addf %272, %26 : vector<1x128xf32>
    %c0_106 = arith.constant 0 : index
    %c0_107 = arith.constant 0 : index
    %274 = vector.load %arg12[%c0_106, %c0_107] : memref<1x128xf32, #tpu.memory_space<vmem>>, vector<1x128xf32>
    tpu.vector_store %arg12[%c0_106, %c0_107], %273 {strides = array<i32>} : memref<1x128xf32, #tpu.memory_space<vmem>>, vector<1x128xf32>,
    %275 = arith.index_cast %arg0 : i32 to index
    %276 = memref.load %arg5[%275] : memref<3xi32, #tpu.memory_space<smem>>
    %c1_i32_108 = arith.constant 1 : i32
    %277 = arith.cmpi eq, %276, %c1_i32_108 : i32
    %278 = arith.extui %277 : i1 to i32
    %c0_i32_109 = arith.constant 0 : i32
    %279 = arith.cmpi ne, %278, %c0_i32_109 : i32
    scf.if %279 {
      %283 = arith.index_cast %arg0 : i32 to index
      %284 = memref.load %arg3[%283] : memref<3xf32, #tpu.memory_space<smem>>
      %c0_112 = arith.constant 0 : index
      %c0_113 = arith.constant 0 : index
      %285 = vector.load %arg12[%c0_112, %c0_113] : memref<1x128xf32, #tpu.memory_space<vmem>>, vector<1x128xf32>
      %286 = vector.shape_cast %285 : vector<1x128xf32> to vector<1x1x128xf32>
      %cst_114 = arith.constant dense<0.000000e+00> : vector<1xf32>
      %287 = vector.multi_reduction <add>, %286, %cst_114 [1, 2] : vector<1x1x128xf32> to vector<1xf32>
      %288 = vector.shape_cast %287 : vector<1xf32> to vector<1x1x1xf32>
      %289 = vector.extract %288[0, 0, 0] : f32 from vector<1x1x1xf32>
      %290 = arith.mulf %289, %284 : f32
      %c0_115 = arith.constant 0 : index
      %c0_116 = arith.constant 0 : index
      %291 = vector.load %arg9[%c0_115, %c0_116] : memref<16x128xf32, #tpu.memory_space<vmem>>, vector<16x128xf32>
      %cst_117 = arith.constant dense<0.000000e+00> : vector<16xf32>
      %292 = vector.multi_reduction <add>, %291, %cst_117 [1] : vector<16x128xf32> to vector<16xf32>
      %293 = vector.shape_cast %292 : vector<16xf32> to vector<16x1xf32>
      %c0_118 = arith.constant 0 : index
      %c0_119 = arith.constant 0 : index
      %294 = vector.load %arg10[%c0_118, %c0_119] : memref<16x128xf32, #tpu.memory_space<vmem>>, vector<16x128xf32>
      %cst_120 = arith.constant dense<0.000000e+00> : vector<16xf32>
      %295 = vector.multi_reduction <add>, %294, %cst_120 [1] : vector<16x128xf32> to vector<16xf32>
      %296 = vector.shape_cast %295 : vector<16xf32> to vector<16x1xf32>
      %c0_121 = arith.constant 0 : index
      %c0_122 = arith.constant 0 : index
      %297 = vector.load %arg11[%c0_121, %c0_122] : memref<16x128xf32, #tpu.memory_space<vmem>>, vector<16x128xf32>
      %cst_123 = arith.constant dense<0.000000e+00> : vector<16xf32>
      %298 = vector.multi_reduction <add>, %297, %cst_123 [1] : vector<16x128xf32> to vector<16xf32>
      %299 = vector.shape_cast %298 : vector<16xf32> to vector<16x1xf32>
      %cst_124 = arith.constant 2.000000e+00 : f32
      %300 = vector.broadcast %cst_124 : f32 to vector<16x1xf32>
      %301 = arith.maximumf %293, %300 : vector<16x1xf32>
      %302 = arith.mulf %296, %296 : vector<16x1xf32>
      %303 = arith.divf %302, %301 : vector<16x1xf32>
      %304 = arith.subf %299, %303 : vector<16x1xf32>
      %cst_125 = arith.constant 1.000000e+00 : f32
      %305 = vector.broadcast %cst_125 : f32 to vector<16x1xf32>
      %306 = arith.subf %301, %305 : vector<16x1xf32>
      %307 = arith.divf %304, %306 : vector<16x1xf32>
      %cst_126 = arith.constant 1.500000e+00 : f32
      %308 = vector.broadcast %cst_126 : f32 to vector<16x1xf32>
      %309 = arith.cmpf ogt, %293, %308 : vector<16x1xf32>
      %cst_127 = arith.constant 0.000000e+00 : f32
      %310 = vector.broadcast %cst_127 : f32 to vector<16x1xf32>
      %311 = arith.select %309, %307, %310 : vector<16x1xi1>, vector<16x1xf32>
      %c0_128 = arith.constant 0 : index
      %312 = memref.load %arg13[%c0_128] : memref<1xf32, #tpu.memory_space<smem>>
      %313 = vector.shape_cast %311 : vector<16x1xf32> to vector<1x16x1xf32>
      %cst_129 = arith.constant dense<0.000000e+00> : vector<1xf32>
      %314 = vector.multi_reduction <add>, %313, %cst_129 [1, 2] : vector<1x16x1xf32> to vector<1xf32>
      %315 = vector.shape_cast %314 : vector<1xf32> to vector<1x1x1xf32>
      %316 = vector.extract %315[0, 0, 0] : f32 from vector<1x1x1xf32>
      %317 = arith.addf %290, %316 : f32
      %318 = arith.addf %312, %317 : f32
      %c0_130 = arith.constant 0 : index
      %319 = memref.load %arg13[%c0_130] : memref<1xf32, #tpu.memory_space<smem>>
      memref.store %318, %arg13[%c0_130] : memref<1xf32, #tpu.memory_space<smem>>
    } else {
    }
    %c2_i32_110 = arith.constant 2 : i32
    %280 = arith.cmpi eq, %arg0, %c2_i32_110 : i32
    %281 = arith.extui %280 : i1 to i32
    %c0_i32_111 = arith.constant 0 : i32
    %282 = arith.cmpi ne, %281, %c0_i32_111 : i32
    scf.if %282 {
      %c0_112 = arith.constant 0 : index
      %283 = memref.load %arg13[%c0_112] : memref<1xf32, #tpu.memory_space<smem>>
      %c0_113 = arith.constant 0 : index
      %284 = memref.load %arg8[%c0_113] : memref<1xf32, #tpu.memory_space<smem>>
      memref.store %283, %arg8[%c0_113] : memref<1xf32, #tpu.memory_space<smem>>
    } else {
    }
    return
  }
  func.func @transform_0(%arg0: i32) -> i32 {
    %c0_i32 = arith.constant 0 : i32
    %c0_i32_0 = arith.constant 0 : i32
    return %c0_i32 : i32
  }
  func.func @transform_1(%arg0: i32) -> i32 {
    %c0_i32 = arith.constant 0 : i32
    %c0_i32_0 = arith.constant 0 : i32
    return %c0_i32 : i32
  }
  func.func @transform_2(%arg0: i32) -> i32 {
    %c0_i32 = arith.constant 0 : i32
    %c0_i32_0 = arith.constant 0 : i32
    return %c0_i32 : i32
  }
  func.func @transform_3(%arg0: i32) -> i32 {
    %c0_i32 = arith.constant 0 : i32
    %c0_i32_0 = arith.constant 0 : i32
    return %c0_i32 : i32
  }
  func.func @transform_4(%arg0: i32) -> i32 {
    %c0_i32 = arith.constant 0 : i32
    %c0_i32_0 = arith.constant 0 : i32
    return %c0_i32 : i32
  }
  func.func @transform_5(%arg0: i32) -> (i32, i32) {
    %c0_i32 = arith.constant 0 : i32
    %c0_i32_0 = arith.constant 0 : i32
    return %arg0, %c0_i32 : i32, i32
  }
  func.func @transform_6(%arg0: i32) -> (i32, i32) {
    %c0_i32 = arith.constant 0 : i32
    %c0_i32_0 = arith.constant 0 : i32
    return %arg0, %c0_i32 : i32, i32
  }
  func.func @transform_7(%arg0: i32) -> i32 {
    %c0_i32 = arith.constant 0 : i32
    %c0_i32_0 = arith.constant 0 : i32
    return %c0_i32 : i32
  }
}

</mosaic_0001>

<bundles_post_ra>
// kernel: tpu_custom_call.1
= control target key start
LH: loop header
LB: loop body
LE: loop exit
PB: predicated region body
PF: predicated region fallthrough
CT: control target
= control target key end

     0   :  { %12 = vsyncpa [#allocation9], 0  ;;  %s1984_s0 = inlined_call_operand.hbm [shape: f32[3], index: 0, kind: input, shape index: {}]   ;;  %s1985_s1 = inlined_call_operand.vmem [shape: s32[3], index: 1, kind: input, shape index: {}]   ;;  %s1986_s2 = inlined_call_operand.vmem [shape: f32[3], index: 2, kind: input, shape index: {}]   ;;  %s1987_s3 = inlined_call_operand.vmem [shape: s32[3], index: 3, kind: input, shape index: {}]   ;;  %s1988_s4 = inlined_call_operand.vmem [shape: s32[3], index: 4, kind: input, shape index: {}]   ;;  %s1989_s5 = inlined_call_operand.hbm [shape: f32[24,128], index: 5, kind: input, shape index: {}]   ;;  %s1990_s6 = inlined_call_operand.hbm [shape: f32[24,128], index: 6, kind: input, shape index: {}]   ;;  %s1991_s7 = inlined_call_operand.hbm [shape: f32[1], index: 7, kind: output, shape index: {}]  }
   0x1   :  { %13 = vsyncpa [#allocation11], 0 }
   0x2   :  { %14 = vsyncpa [#allocation14], 0 }
   0x3   :  { %15 = vsyncpa [#allocation17], 0 }
   0x4   :  { %16 = vsyncpa [#allocation8], 0 }
   0x5   :  { %18 = vsyncpa [#allocation8 + $0x1], 0 }
   0x6   :  { %19 = vsyncpa [#allocation20], 0 }
   0x7   :  { %21 = vsyncpa [#allocation20 + $0x1], 0 }
   0x8   :  { %22 = vsyncpa [#allocation10], 0  ;;  %s1503_s24 = smov 0   ;;  %s1505_s25 = smov 0  }
   0x9   :  { %s1507_s26 = smov 0   ;;  %s1509_s27 = smov 0  }
   0xa LB: > { %s244_s30 = sshll.u32 %s1986_s2, 4  ;;  %s1527_s8 = sadd.s32 4294967295, %s1450_s27   ;;  %s1450_s27 = sphi %s1509_s27, %s2039_s27   ;;  %s1446_s26 = sphi %s1507_s26, %s2038_s26   ;;  %s1442_s25 = sphi %s1505_s25, %s2037_s25   ;;  %s1438_s24 = sphi %s1503_s24, %s2036_s24   ;;  %s245_s30 = int_to_ptr.vmem [resolvable:$true] %s244_s30 }
   0xb   : > { %p1076_p0 = scmp.ge.s32.totalorder %s1450_s27, 1  ;;  %p1992_p1 = scmp.eq.s32.totalorder %s1527_s8, 0 }
   0xc   : > { %p211_p2 = scmp.lt.s32.totalorder %s1450_s27, 4  ;;  %s233_s12 = sshll.u32 %s1985_s1, 4  ;;  %s1541_s12 = int_to_ptr.vmem [resolvable:$true] %s233_s12 }
   0xd   : > { %s255_s15 = sshll.u32 %s1987_s3, 4  ;;  %s266_s19 = sshll.u32 %s1988_s4, 4  ;;  %s1552_s15 = int_to_ptr.vmem [resolvable:$true] %s255_s15  ;;  %s1557_s19 = int_to_ptr.vmem [resolvable:$true] %s266_s19 }
   0xe   : > { %p1532_p3 = pnand %p1076_p0, %p211_p2  ;;  %s1247_s20 = scalar_lea.vmem %s245_s30, 16 }
   0xf   : > { %p1248_p6 = scmp.ne.s32.totalorder %s245_s30, %s1247_s20  ;;  %p1255_p10 = scmp.lt.s32.totalorder %s245_s30, %s245_s30 }
  0x10   : > { %s2004_s9 = scalar_select %p1532_p3, 1, 0 }
  0x11   : > { %p1160_p4 = pneg %p1532_p3  ;;  %p1256_p11 = scmp.lt.s32.totalorder %s1247_s20, %s1247_s20 }
  0x13   : > { %p1548_p5 = pnand %p1160_p4, %p1992_p1  ;;  %p1257_p12 = por %p1256_p11, %p1255_p10 }
  0x15   : > { %p1561_p7 = pneg %p1548_p5 }
  0x17   : > { %p1250_p8 = pnand %p1561_p7, %p1248_p6 }
  0x19   : > { %p1251_p9 = pneg %p1250_p8 }
  0x1b   : > { %p1258_p13 = pnand %p1257_p12, %p1251_p9 }
  0x1d   : > { %1261 = shalt.err (!%p1258_p13)
}
  0x1e   : > { %s1452_s22 = smov [#allocation13]   ;;  %s1262_s29 = scalar_lea.hbm %s1984_s0, 16 }
  0x1f   : > { %1169 = dma.vmem_to_smem (!%p1548_p5), %s245_s30, 16, %s1452_s22, [#allocation14]  }
  0x20   : > { %p1263_p0 = scmp.ne.s32.totalorder %s1984_s0, %s1262_s29  ;;  %p1269_p6 = scmp.lt.u32.totalorder %s1262_s29, %s1984_s0 }
  0x22   : > { %p1265_p2 = pnand %p1263_p0, %p1561_p7 }
  0x24   : > { %p1266_p4 = pneg %p1265_p2 }
  0x26   : > { %p1271_p8 = pnand %p1269_p6, %p1266_p4 }
  0x28   : > { %1274 = shalt.err (!%p1271_p8)
}
  0x29   : > { %s1453_s17 = smov [#allocation7]   ;;  %s1275_s20 = scalar_lea.vmem %s1541_s12, 16 }
  0x2a   : > { %1163 = dma.hbm_to_smem (!%p1548_p5), %s1984_s0, 16, %s1453_s17, [#allocation9]  }
  0x2b   : > { %p1276_p9 = scmp.ne.s32.totalorder %s1541_s12, %s1275_s20  ;;  %p1283_p12 = scmp.lt.s32.totalorder %s1541_s12, %s1541_s12 }
  0x2c   : > { %p1284_p13 = scmp.lt.s32.totalorder %s1275_s20, %s1275_s20 }
  0x2d   : > { %p1278_p10 = pnand %p1276_p9, %p1561_p7 }
  0x2e   : > { %p1285_p0 = por %p1284_p13, %p1283_p12 }
  0x2f   : > { %p1279_p11 = pneg %p1278_p10 }
  0x31   : > { %p1286_p2 = pnand %p1285_p0, %p1279_p11 }
  0x33   : > { %1289 = shalt.err (!%p1286_p2)
}
  0x34   : > { %s1454_s22 = smov [#allocation12]   ;;  %s1290_s23 = scalar_lea.vmem %s1552_s15, 16 }
  0x35   : > { %1166 = dma.vmem_to_smem (!%p1548_p5), %s1541_s12, 16, %s1454_s22, [#allocation11]  }
  0x36   : > { %p1291_p4 = scmp.ne.s32.totalorder %s1552_s15, %s1290_s23  ;;  %p1298_p9 = scmp.lt.s32.totalorder %s1552_s15, %s1552_s15 }
  0x37   : > { %p1299_p10 = scmp.lt.s32.totalorder %s1290_s23, %s1290_s23 }
  0x38   : > { %p1293_p6 = pnand %p1291_p4, %p1561_p7 }
  0x39   : > { %p1300_p12 = por %p1299_p10, %p1298_p9 }
  0x3a   : > { %p1294_p8 = pneg %p1293_p6 }
  0x3c   : > { %p1301_p11 = pnand %p1300_p12, %p1294_p8 }
  0x3e   : > { %1304 = shalt.err (!%p1301_p11)
}
  0x3f   : > { %s1455_s28 = smov [#allocation15]   ;;  %s1305_s12 = scalar_lea.vmem %s1557_s19, 16 }
  0x40   : > { %1172 = dma.vmem_to_smem (!%p1548_p5), %s1552_s15, 16, %s1455_s28, [#allocation14]  }
  0x41   : > { %p1306_p13 = scmp.ne.s32.totalorder %s1557_s19, %s1305_s12  ;;  %p1313_p4 = scmp.lt.s32.totalorder %s1557_s19, %s1557_s19 }
  0x42   : > { %p1314_p6 = scmp.lt.s32.totalorder %s1305_s12, %s1305_s12 }
  0x43   : > { %p1308_p0 = pnand %p1306_p13, %p1561_p7 }
  0x44   : > { %p1315_p9 = por %p1314_p6, %p1313_p4 }
  0x45   : > { %p1309_p2 = pneg %p1308_p0 }
  0x47   : > { %p1316_p8 = pnand %p1315_p9, %p1309_p2 }
  0x49   : > { %1319 = shalt.err (!%p1316_p8)
}
  0x4a   : > { %s1456_s29 = smov [#allocation16]   ;;  %s1613_s15 = sadd.s32 1, %s1450_s27  }
  0x4b   : > { %1175 = dma.vmem_to_smem (!%p1548_p5), %s1557_s19, 16, %s1456_s29, [#allocation17]  }
  0x4c   : > { %s137_s21 = ssub.s32 %s1450_s27, %s1613_s15  ;;  %s140_s16 = sadd.s32 1, %s1446_s26 }
  0x4d   : > { %p138_p7 = scmp.eq.s32.totalorder %s137_s21, 0  ;;  %p147_p10 = scmp.ne.s32.totalorder %s1446_s26, %s1442_s25 }
  0x4e   : > { %p148_p12 = scmp.eq.s32.totalorder %s1450_s27, 0  ;;  %p153_p11 = scmp.ne.s32.totalorder %s1442_s25, %s1438_s24 }
  0x4f   : > { %s1624_s10 = scalar_select %p138_p7, %s1446_s26, %s140_s16  }
  0x50   : > { %p149_p13 = por %p148_p12, %p147_p10  ;;  %p1628_p0 = por %p1992_p1, %p153_p11 }
  0x51   : > { %p1188_p2 = scmp.lt.s32.totalorder %s1450_s27, 3  ;;  %s1634_s13 = sand.u32 1, %s1446_s26  }
  0x52   : > { %s2007_s11 = scalar_select %p1628_p0, 1, 0 }
  0x53   : > { %s1083_s19 = sshll.u32 %s1634_s13, 3  ;;  %s1084_s14 = sshll.u32 %s1450_s27, 7 }
  0x54   : > { %s1641_s24 = scalar_lea.hbm %s1989_s5, %s1084_s14  ;;  %s281_s18 = scalar_lea.vmem [#allocation18], %s1083_s19 }
  0x55   : > { %s288_s20 = sshll.u32 %s281_s18, 4  ;;  %p1647_p5 = pnand %p1188_p2, %p149_p13  ;;  %s1645_s20 = int_to_ptr.vmem [resolvable:$true] %s288_s20 }
  0x56   : > { %s1654_s28 = scalar_lea.hbm %s1990_s6, %s1084_s14  ;;  %s278_s12 = scalar_lea.sflag [#allocation8], %s1634_s13 }
  0x57   : > { %s1320_s29 = scalar_lea.hbm %s1641_s24, 128  ;;  %p1322_p6 = pneg %p1647_p5 }
  0x58   : > { %p1321_p4 = scmp.ne.s32.totalorder %s1641_s24, %s1320_s29  ;;  %s1325_s17 = scalar_lea.hbm %s1989_s5, 384 }
  0x59   : > { %p1326_p7 = scmp.lt.u32.totalorder %s1641_s24, %s1989_s5  ;;  %p1327_p10 = scmp.lt.u32.totalorder %s1325_s17, %s1320_s29 }
  0x5a   : > { %p1323_p9 = pnand %p1322_p6, %p1321_p4  ;;  %p1329_p11 = scmp.lt.u32.totalorder %s1320_s29, %s1641_s24 }
  0x5b   : > { %p1328_p12 = por %p1327_p10, %p1326_p7 }
  0x5c   : > { %p1324_p8 = pneg %p1323_p9 }
  0x5d   : > { %p1330_p13 = por %p1329_p11, %p1328_p12 }
  0x5f   : > { %p1331_p2 = pnand %p1330_p13, %p1324_p8 }
  0x61   : > { %1334 = shalt.err (!%p1331_p2)
}
  0x62   : > { %s1335_s14 = scalar_lea.vmem %s1645_s20, 128  ;;  %s1457_s23 = smov [#allocation18]  }
  0x63   : > { %p1336_p4 = scmp.ne.s32.totalorder %s1645_s20, %s1335_s14  ;;  %s1340_s27 = sshll.u32 %s1457_s23, 4  ;;  %s1341_s27 = int_to_ptr.vmem [resolvable:$false] %s1340_s27 }
  0x64   : > { %s1342_s21 = scalar_lea.vmem %s1341_s27, 256  ;;  %p1343_p0 = scmp.lt.s32.totalorder %s1645_s20, %s1341_s27 }
  0x65   : > { %p1338_p9 = pnand %p1336_p4, %p1322_p6  ;;  %p1344_p7 = scmp.lt.s32.totalorder %s1342_s21, %s1335_s14 }
  0x67   : > { %p1339_p1 = pneg %p1338_p9  ;;  %p1345_p10 = por %p1344_p7, %p1343_p0 }
  0x69   : > { %p1346_p12 = pnand %p1345_p10, %p1339_p1 }
  0x6b   : > { %1349 = shalt.err (!%p1346_p12)
}
  0x6c   : > { %1179 = dma.hbm_to_vmem [thread:$0]  (!%p1647_p5), %s1641_s24, 128, %s1645_s20, %s278_s12  }
  0x6d   : > { %s299_s29 = scalar_lea.vmem [#allocation19], %s1083_s19  ;;  %s296_s17 = scalar_lea.sflag [#allocation20], %s1634_s13 }
  0x6e   : > { %s306_s16 = sshll.u32 %s299_s29, 4  ;;  %s1350_s30 = scalar_lea.hbm %s1654_s28, 128  ;;  %s307_s16 = int_to_ptr.vmem [resolvable:$true] %s306_s16 }
  0x6f   : > { %p1351_p1 = scmp.ne.s32.totalorder %s1654_s28, %s1350_s30  ;;  %s1355_s23 = scalar_lea.hbm %s1990_s6, 384 }
  0x70   : > { %p1356_p11 = scmp.lt.u32.totalorder %s1654_s28, %s1990_s6  ;;  %p1357_p13 = scmp.lt.u32.totalorder %s1355_s23, %s1350_s30 }
  0x71   : > { %p1353_p0 = pnand %p1351_p1, %p1322_p6  ;;  %p1359_p4 = scmp.lt.u32.totalorder %s1350_s30, %s1654_s28 }
  0x72   : > { %p1358_p2 = por %p1357_p13, %p1356_p11 }
  0x73   : > { %p1354_p8 = pneg %p1353_p0 }
  0x74   : > { %p1360_p9 = por %p1359_p4, %p1358_p2 }
  0x76   : > { %p1361_p7 = pnand %p1360_p9, %p1354_p8 }
  0x78   : > { %1364 = shalt.err (!%p1361_p7)
}
  0x79   : > { %s1365_s13 = scalar_lea.vmem %s307_s16, 128  ;;  %s1458_s19 = smov [#allocation19]  }
  0x7a   : > { %p1366_p10 = scmp.ne.s32.totalorder %s307_s16, %s1365_s13  ;;  %s1370_s24 = sshll.u32 %s1458_s19, 4  ;;  %s1371_s24 = int_to_ptr.vmem [resolvable:$false] %s1370_s24 }
  0x7b   : > { %s1372_s20 = scalar_lea.vmem %s1371_s24, 256  ;;  %p1373_p0 = scmp.lt.s32.totalorder %s307_s16, %s1371_s24 }
  0x7c   : > { %p1368_p12 = pnand %p1366_p10, %p1322_p6  ;;  %p1374_p3 = scmp.lt.s32.totalorder %s1372_s20, %s1365_s13 }
  0x7e   : > { %p1369_p1 = pneg %p1368_p12  ;;  %p1375_p11 = por %p1374_p3, %p1373_p0 }
  0x80   : > { %p1376_p13 = pnand %p1375_p11, %p1369_p1 }
  0x82   : > { %1379 = shalt.err (!%p1376_p13)
}
  0x83   : > { %1182 = dma.hbm_to_vmem [thread:$0]  (!%p1647_p5), %s1654_s28, 128, %s307_s16, %s296_s17  }
  0x84   : > { %p2009_p8 = scmp.ne.s32.totalorder %s2004_s9, 0 }
  0x85   : > { %p2010_p2 = scmp.eq.s32.totalorder (!%p2009_p8), %s1527_s8, 0 }
  0x86   : > { %315 = sbr.rel (%p2009_p8) target bundleno = 681 (0x2a9), region = 48 }
  0x8d   : > { %1409 = dma.done.wait (%p2010_p2), [#allocation9], 16   ;;  %p2011_p6 = pmov %p2010_p2 }
  0x8e   : > { %p2012_p4 = pmov %p2010_p2 }
  0x8f   : > { %1411 = vsyncadd (%p2011_p6), [#allocation9], 4294967280 }
  0x90   : > { %1413 = dma.done.wait (%p2012_p4), [#allocation11], 16   ;;  %p2013_p3 = pmov %p2010_p2 }
  0x91   : > { %p2014_p9 = pmov %p2010_p2 }
  0x92   : > { %1415 = vsyncadd (%p2013_p3), [#allocation11], 4294967280 }
  0x93   : > { %1417 = dma.done.wait (%p2014_p9), [#allocation14], 32   ;;  %p2015_p5 = pmov %p2010_p2 }
  0x94   : > { %p2016_p7 = pmov %p2010_p2 }
  0x95   : > { %1419 = vsyncadd (%p2015_p5), [#allocation14], 4294967264 }
  0x96   : > { %1421 = dma.done.wait (%p2016_p7), [#allocation17], 16   ;;  %p2017_p10 = pmov %p2010_p2 }
  0x97   : > { %s337_s9 = sand.u32 1, %s1442_s25   ;;  %p2018_p12 = scmp.ne.s32.totalorder %s2007_s11, 0 }
  0x98   : > { %1423 = vsyncadd (%p2017_p10), [#allocation17], 4294967280  ;;  %s1093_s22 = sshll.u32 %s337_s9, 3  ;;  %s338_s28 = scalar_lea.sflag [#allocation8], %s337_s9 }
  0x99   : > { %s341_s12 = scalar_lea.vmem [#allocation18], %s1093_s22 }
  0x9a   : > { %1425 = dma.done.wait (%p2018_p12), %s338_s28, 128  }
  0x9b   : > { %1427 = vsyncadd (%p2018_p12), %s338_s28, 4294967168  ;;  %s347_s29 = scalar_lea.sflag [#allocation20], %s337_s9  ;;  %s350_s16 = scalar_lea.vmem [#allocation19], %s1093_s22 }
  0x9c   : > { %1429 = dma.done.wait (%p2018_p12), %s347_s29, 128  }
  0x9d   : > { %1431 = vsyncadd (%p2018_p12), %s347_s29, 4294967168 }
  0x9e   : > { %355 = sfence }
  0x9f   : > { %s388_s17 = sld [smem:[#allocation15 + %s1527_s8]]  ;;  %s1459_s30 = smov 0.0  }
  0xa0   : > { %p2019_p1 = pmov %p2010_p2 }
  0xa2   : > { %1153 = sst [smem:[#allocation6]] (%p2019_p1), %s1459_s30 }
  0xa5   : > { %p1096_p0 = scmp.ne.s32.totalorder %s388_s17, 1 }
  0xa6   : > { %v1460_v0 = vmov (!%p1096_p0), 0.0  }
  0xa7   : > { %392 = sbr.rel (%p1096_p0) target bundleno = 174 (0xae), region = 84  ;;  %393 = vst [vmem:[#allocation2] sm:$0xff] (!%p1096_p0), %v1460_v0  ;;  %394 = vst [vmem:[#allocation2 + $0x8] sm:$0xff] (!%p1096_p0), %v1460_v0 }
  0xa8   : > { %395 = vst [vmem:[#allocation3] sm:$0xff] (!%p1096_p0), %v1460_v0  ;;  %396 = vst [vmem:[#allocation3 + $0x8] sm:$0xff] (!%p1096_p0), %v1460_v0 }
  0xa9   : > { %397 = vst [vmem:[#allocation4] sm:$0xff] (!%p1096_p0), %v1460_v0  ;;  %398 = vst [vmem:[#allocation4 + $0x8] sm:$0xff] (!%p1096_p0), %v1460_v0 }
  0xaa   : > { %399 = vst [vmem:[#allocation5] sm:$0x1] (!%p1096_p0), %v1460_v0 }
  0xae PF: > { %s400_s11 = sld [smem:[#allocation7 + %s1527_s8]]  ;;  %v402_v1 = vld [vmem:[%s341_s12] sm:$0xff]  ;;  %v403_v2 = vld [vmem:[%s350_s16] sm:$0xff]  ;;  %v1461_v14 = vmov 0.0   ;;  %vm786_vm8 = vcmask 1040384   ;;  %vm788_vm9 = vcmask 1041408  }
  0xaf   : > { %s401_s18 = sld [smem:[#allocation12 + %s1527_s8]]  ;;  %v1736_v3 = vsub.f32 %v402_v1, %v403_v2  ;;  %vm790_vm10 = vcmask 1042432   ;;  %vm792_vm11 = vcmask 1043456   ;;  %vm794_vm12 = vcmask 1044480  }
  0xb0   : > { %s1743_s14 = sld [smem:[#allocation16 + %s1527_s8]]  ;;  %vm796_vm13 = vcmask 1045504   ;;  %vm798_vm14 = vcmask 1046528  }
  0xb1   : > { %v1740_v4 = vmul.f32 %v1736_v3, %v1736_v3 }
  0xb3   : > { %v406_v5 = vrot.slane %v1740_v4, 4 }
  0xb4   : > { %v413_v6 = vstv %s400_s11 }
  0xb5   : > { %v414_v7 = vmul.f32 %v413_v6, %v403_v2  ;;  %v407_v8 = vadd.f32 %v406_v5, %v1740_v4  ;;  %v416_v9 = vstv %s401_s18 }
  0xb6   : > { %p1113_p11 = scmp.ne.s32.totalorder %s1743_s14, 1 }
  0xb7   : > { %v1123_v10 = vcvt.f32.s32 %v414_v7  ;;  %v408_v11 = vrot.slane %v407_v8, 2  ;;  %s867_s23 = sld [smem:[#allocation13 + %s1527_s8]] (!%p1113_p11) }
  0xb8   : > { %s918_s27 = sld [smem:[#allocation6]] (!%p1113_p11) }
  0xb9   : > { %v1747_v12 = vsub.s32 %v1123_v10, %v416_v9  ;;  %v1749_v13 = vadd.f32 %v408_v11, %v407_v8 }
  0xbb   : > { %vm418_vm0 = vcmp.eq.s32.totalorder %v1747_v12, 0  ;;  %vm441_vm1 = vcmp.eq.s32.totalorder %v1747_v12, 1  ;;  %vm2003_vm2 = vcmp.eq.s32.totalorder %v1747_v12, 2  ;;  %vm2002_vm3 = vcmp.eq.s32.totalorder %v1747_v12, 3 }
  0xbc   : > { %v1097_v15 = vsel %vm418_vm0, 1.0, %v1461_v14  ;;  %v1098_v16 = vsel %vm441_vm1, 1.0, %v1461_v14  ;;  %v1099_v17 = vsel %vm2003_vm2, 1.0, %v1461_v14  ;;  %v1100_v18 = vsel %vm2002_vm3, 1.0, %v1461_v14 }
  0xbd   : > { %v421_v19 = vrot.slane %v1097_v15, 4  ;;  %v444_v20 = vrot.slane %v1098_v16, 4  ;;  %v467_v21 = vrot.slane %v1099_v17, 4  ;;  %v490_v22 = vrot.slane %v1100_v18, 4 }
  0xbe   : > { %vm510_vm4 = vcmp.eq.s32.totalorder %v1747_v12, 4  ;;  %vm1998_vm5 = vcmp.eq.s32.totalorder %v1747_v12, 5  ;;  %vm1996_vm6 = vcmp.eq.s32.totalorder %v1747_v12, 6  ;;  %vm1995_vm7 = vcmp.eq.s32.totalorder %v1747_v12, 7 }
  0xbf   : > { %v422_v23 = vadd.f32 %v1097_v15, %v421_v19  ;;  %v445_v24 = vadd.f32 %v1098_v16, %v444_v20  ;;  %v468_v25 = vadd.f32 %v1099_v17, %v467_v21  ;;  %v491_v26 = vadd.f32 %v1100_v18, %v490_v22 }
  0xc0   : > { %v1101_v27 = vsel %vm510_vm4, 1.0, %v1461_v14  ;;  %v1102_v28 = vsel %vm1998_vm5, 1.0, %v1461_v14  ;;  %v1103_v29 = vsel %vm1996_vm6, 1.0, %v1461_v14  ;;  %v1104_v30 = vsel %vm1995_vm7, 1.0, %v1461_v14 }
  0xc1   : > { %v423_v31 = vrot.slane %v422_v23, 2  ;;  %v446_v32 = vrot.slane %v445_v24, 2  ;;  %v469_v33 = vrot.slane %v468_v25, 2  ;;  %v492_v34 = vrot.slane %v491_v26, 2 }
  0xc2   : > { %v513_v35 = vrot.slane %v1101_v27, 4  ;;  %v536_v36 = vrot.slane %v1102_v28, 4  ;;  %v559_v37 = vrot.slane %v1103_v29, 4  ;;  %v582_v38 = vrot.slane %v1104_v30, 4 }
  0xc3   : > { %v424_v39 = vadd.f32 %v423_v31, %v422_v23  ;;  %v447_v40 = vadd.f32 %v446_v32, %v445_v24  ;;  %v470_v41 = vadd.f32 %v469_v33, %v468_v25  ;;  %v493_v42 = vadd.f32 %v492_v34, %v491_v26  ;;  %v841_v23 = vld [vmem:[#allocation2] sm:$0xff] }
  0xc4   : > { %v514_v43 = vadd.f32 %v1101_v27, %v513_v35  ;;  %v537_v44 = vadd.f32 %v1102_v28, %v536_v36  ;;  %v560_v45 = vadd.f32 %v1103_v29, %v559_v37  ;;  %v583_v46 = vadd.f32 %v1104_v30, %v582_v38 }
  0xc5   : > { %v425_v47 = vrot.slane %v424_v39, 1  ;;  %v448_v48 = vrot.slane %v447_v40, 1  ;;  %v471_v49 = vrot.slane %v470_v41, 1  ;;  %v494_v50 = vrot.slane %v493_v42, 1 }
  0xc6   : > { %v515_v51 = vrot.slane %v514_v43, 2  ;;  %v538_v52 = vrot.slane %v537_v44, 2  ;;  %v561_v53 = vrot.slane %v560_v45, 2  ;;  %v584_v54 = vrot.slane %v583_v46, 2 }
  0xc7   : > { %v426_v55 = vadd.f32 %v425_v47, %v424_v39  ;;  %v449_v56 = vadd.f32 %v448_v48, %v447_v40  ;;  %v472_v57 = vadd.f32 %v471_v49, %v470_v41  ;;  %v495_v58 = vadd.f32 %v494_v50, %v493_v42 }
  0xc8   : > { %v516_v59 = vadd.f32 %v515_v51, %v514_v43  ;;  %v539_v60 = vadd.f32 %v538_v52, %v537_v44  ;;  %v562_v61 = vadd.f32 %v561_v53, %v560_v45  ;;  %v585_v62 = vadd.f32 %v584_v54, %v583_v46 }
  0xc9   : > { %v787_v63 = vsel %vm786_vm8, %v426_v55, %v449_v56  ;;  %vm1997_vm15 = vcmp.eq.s32.totalorder %v1747_v12, 8  ;;  %vm1999_vm7 = vcmp.eq.s32.totalorder %v1747_v12, 9  ;;  %vm648_vm6 = vcmp.eq.s32.totalorder %v1747_v12, 10 }
  0xca   : > { %v517_v0 = vrot.slane %v516_v59, 1  ;;  %v540_v1 = vrot.slane %v539_v60, 1  ;;  %v563_v2 = vrot.slane %v562_v61, 1  ;;  %v586_v5 = vrot.slane %v585_v62, 1 }
  0xcb   : > { %v789_v6 = vsel %vm788_vm9, %v787_v63, %v472_v57  ;;  %v1105_v7 = vsel %vm1997_vm15, 1.0, %v1461_v14  ;;  %v1106_v8 = vsel %vm1999_vm7, 1.0, %v1461_v14  ;;  %v1107_v9 = vsel %vm648_vm6, 1.0, %v1461_v14 }
  0xcc   : > { %v518_v10 = vadd.f32 %v517_v0, %v516_v59  ;;  %v541_v11 = vadd.f32 %v540_v1, %v539_v60  ;;  %v564_v15 = vadd.f32 %v563_v2, %v562_v61  ;;  %v587_v16 = vadd.f32 %v586_v5, %v585_v62 }
  0xcd   : > { %v791_v17 = vsel %vm790_vm10, %v789_v6, %v495_v58  ;;  %v605_v18 = vrot.slane %v1105_v7, 4  ;;  %v628_v19 = vrot.slane %v1106_v8, 4  ;;  %v651_v20 = vrot.slane %v1107_v9, 4 }
  0xce   : > { %v793_v21 = vsel %vm792_vm11, %v791_v17, %v518_v10  ;;  %vm2000_vm15 = vcmp.eq.s32.totalorder %v1747_v12, 11  ;;  %vm694_vm5 = vcmp.eq.s32.totalorder %v1747_v12, 12  ;;  %vm2001_vm7 = vcmp.eq.s32.totalorder %v1747_v12, 13 }
  0xcf   : > { %v795_v22 = vsel %vm794_vm12, %v793_v21, %v541_v11  ;;  %v606_v24 = vadd.f32 %v1105_v7, %v605_v18  ;;  %v629_v25 = vadd.f32 %v1106_v8, %v628_v19  ;;  %v652_v26 = vadd.f32 %v1107_v9, %v651_v20 }
  0xd0   : > { %v797_v27 = vsel %vm796_vm13, %v795_v22, %v564_v15  ;;  %v1108_v28 = vsel %vm2000_vm15, 1.0, %v1461_v14  ;;  %v1109_v29 = vsel %vm694_vm5, 1.0, %v1461_v14  ;;  %v1110_v30 = vsel %vm2001_vm7, 1.0, %v1461_v14 }
  0xd1   : > { %v799_v31 = vsel %vm798_vm14, %v797_v27, %v587_v16  ;;  %v607_v32 = vrot.slane %v606_v24, 2  ;;  %v630_v33 = vrot.slane %v629_v25, 2  ;;  %v653_v34 = vrot.slane %v652_v26, 2 }
  0xd2   : > { %v843_v35 = vadd.f32 %v841_v23, %v799_v31  ;;  %v674_v36 = vrot.slane %v1108_v28, 4  ;;  %v697_v37 = vrot.slane %v1109_v29, 4  ;;  %v720_v38 = vrot.slane %v1110_v30, 4 }
  0xd3   : > { %v608_v39 = vadd.f32 %v607_v32, %v606_v24  ;;  %v631_v40 = vadd.f32 %v630_v33, %v629_v25  ;;  %v654_v41 = vadd.f32 %v653_v34, %v652_v26  ;;  %vm740_vm15 = vcmp.eq.s32.totalorder %v1747_v12, 14 }
  0xd4   : > { %845 = vst [vmem:[#allocation2] sm:$0xff] %v843_v35  ;;  %v675_v42 = vadd.f32 %v1108_v28, %v674_v36  ;;  %v698_v43 = vadd.f32 %v1109_v29, %v697_v37  ;;  %v721_v44 = vadd.f32 %v1110_v30, %v720_v38  ;;  %v1111_v45 = vsel %vm740_vm15, 1.0, %v1461_v14 }
  0xd5   : > { %v609_v46 = vrot.slane %v608_v39, 1  ;;  %v632_v47 = vrot.slane %v631_v40, 1  ;;  %v655_v48 = vrot.slane %v654_v41, 1  ;;  %v743_v49 = vrot.slane %v1111_v45, 4 }
  0xd6   : > { %v676_v50 = vrot.slane %v675_v42, 2  ;;  %v699_v51 = vrot.slane %v698_v43, 2  ;;  %v722_v52 = vrot.slane %v721_v44, 2  ;;  %vm763_vm7 = vcmp.eq.s32.totalorder %v1747_v12, 15 }
  0xd7   : > { %v610_v53 = vadd.f32 %v609_v46, %v608_v39  ;;  %v633_v54 = vadd.f32 %v632_v47, %v631_v40  ;;  %v656_v55 = vadd.f32 %v655_v48, %v654_v41  ;;  %v744_v56 = vadd.f32 %v1111_v45, %v743_v49 }
  0xd8   : > { %v677_v57 = vadd.f32 %v676_v50, %v675_v42  ;;  %v700_v58 = vadd.f32 %v699_v51, %v698_v43  ;;  %v723_v59 = vadd.f32 %v722_v52, %v721_v44  ;;  %v1112_v60 = vsel %vm763_vm7, 1.0, %v1461_v14  ;;  %v842_v42 = vld [vmem:[#allocation2 + $0x8] sm:$0xff] }
  0xd9   : > { %v745_v61 = vrot.slane %v744_v56, 2  ;;  %v766_v62 = vrot.slane %v1112_v60, 4  ;;  %v800_v63 = vsel %vm786_vm8, %v610_v53, %v633_v54  ;;  %v427_v0 = vsel %vm418_vm0, %v1736_v3, 0.0 }
  0xda   : > { %v678_v1 = vrot.slane %v677_v57, 1  ;;  %v701_v2 = vrot.slane %v700_v58, 1  ;;  %v724_v5 = vrot.slane %v723_v59, 1  ;;  %v801_v6 = vsel %vm788_vm9, %v800_v63, %v656_v55 }
  0xdb   : > { %v746_v7 = vadd.f32 %v745_v61, %v744_v56  ;;  %v767_v8 = vadd.f32 %v1112_v60, %v766_v62  ;;  %v428_v9 = vrot.slane %v427_v0, 4  ;;  %v450_v14 = vsel %vm441_vm1, %v1736_v3, 0.0 }
  0xdc   : > { %v679_v10 = vadd.f32 %v678_v1, %v677_v57  ;;  %v702_v11 = vadd.f32 %v701_v2, %v700_v58  ;;  %v725_v15 = vadd.f32 %v724_v5, %v723_v59  ;;  %v451_v16 = vrot.slane %v450_v14, 4 }
  0xdd   : > { %v747_v17 = vrot.slane %v746_v7, 1  ;;  %v768_v18 = vrot.slane %v767_v8, 2  ;;  %v429_v19 = vadd.f32 %v428_v9, %v427_v0  ;;  %v473_v20 = vsel %vm2003_vm2, %v1736_v3, 0.0 }
  0xde   : > { %v802_v21 = vsel %vm790_vm10, %v801_v6, %v679_v10  ;;  %v452_v22 = vadd.f32 %v451_v16, %v450_v14  ;;  %v474_v23 = vrot.slane %v473_v20, 4  ;;  %v496_v24 = vsel %vm2002_vm3, %v1736_v3, 0.0 }
  0xdf   : > { %v748_v25 = vadd.f32 %v747_v17, %v746_v7  ;;  %v769_v26 = vadd.f32 %v768_v18, %v767_v8  ;;  %v803_v27 = vsel %vm792_vm11, %v802_v21, %v702_v11  ;;  %v430_v28 = vrot.slane %v429_v19, 2 }
  0xe0   : > { %v804_v29 = vsel %vm794_vm12, %v803_v27, %v725_v15  ;;  %v453_v30 = vrot.slane %v452_v22, 2  ;;  %v475_v31 = vadd.f32 %v474_v23, %v473_v20  ;;  %v497_v32 = vrot.slane %v496_v24, 4 }
  0xe1   : > { %v770_v33 = vrot.slane %v769_v26, 1  ;;  %v805_v34 = vsel %vm796_vm13, %v804_v29, %v748_v25  ;;  %v431_v35 = vadd.f32 %v430_v28, %v429_v19  ;;  %v519_v36 = vsel %vm510_vm4, %v1736_v3, 0.0 }
  0xe2   : > { %v454_v37 = vadd.f32 %v453_v30, %v452_v22  ;;  %v476_v38 = vrot.slane %v475_v31, 2  ;;  %v498_v39 = vadd.f32 %v497_v32, %v496_v24  ;;  %v520_v40 = vrot.slane %v519_v36, 4 }
  0xe3   : > { %v771_v41 = vadd.f32 %v770_v33, %v769_v26  ;;  %v432_v43 = vrot.slane %v431_v35, 1  ;;  %vm2020_vm3 = vcmp.eq.s32.totalorder %v1747_v12, 5  ;;  %vm2021_vm2 = vcmp.eq.s32.totalorder %v1747_v12, 6 }
  0xe4   : > { %v542_v44 = vsel %vm2020_vm3, %v1736_v3, 0.0  ;;  %v565_v45 = vsel %vm2021_vm2, %v1736_v3, 0.0  ;;  %v455_v46 = vrot.slane %v454_v37, 1  ;;  %v477_v47 = vadd.f32 %v476_v38, %v475_v31 }
  0xe5   : > { %v499_v48 = vrot.slane %v498_v39, 2  ;;  %v521_v49 = vadd.f32 %v520_v40, %v519_v36  ;;  %v806_v50 = vsel %vm798_vm14, %v805_v34, %v771_v41  ;;  %v433_v51 = vadd.f32 %v432_v43, %v431_v35 }
  0xe6   : > { %v543_v52 = vrot.slane %v542_v44, 4  ;;  %v566_v53 = vrot.slane %v565_v45, 4  ;;  %v844_v54 = vadd.f32 %v842_v42, %v806_v50  ;;  %v456_v55 = vadd.f32 %v455_v46, %v454_v37 }
  0xe7   : > { %v478_v56 = vrot.slane %v477_v47, 1  ;;  %v500_v57 = vadd.f32 %v499_v48, %v498_v39  ;;  %v522_v58 = vrot.slane %v521_v49, 2  ;;  %vm2022_vm3 = vcmp.eq.s32.totalorder %v1747_v12, 7 }
  0xe8   : > { %v544_v59 = vadd.f32 %v543_v52, %v542_v44  ;;  %v567_v60 = vadd.f32 %v566_v53, %v565_v45  ;;  %v588_v61 = vsel %vm2022_vm3, %v1736_v3, 0.0  ;;  %846 = vst [vmem:[#allocation2 + $0x8] sm:$0xff] %v844_v54  ;;  %v809_v1 = vsel %vm786_vm8, %v433_v51, %v456_v55  ;;  %v847_v44 = vld [vmem:[#allocation3] sm:$0xff] }
  0xe9   : > { %v479_v62 = vadd.f32 %v478_v56, %v477_v47  ;;  %v501_v63 = vrot.slane %v500_v57, 1  ;;  %v589_v0 = vrot.slane %v588_v61, 4  ;;  %v523_v2 = vadd.f32 %v522_v58, %v521_v49 }
  0xea   : > { %v545_v5 = vrot.slane %v544_v59, 2  ;;  %v568_v6 = vrot.slane %v567_v60, 2  ;;  %vm2023_vm2 = vcmp.eq.s32.totalorder %v1747_v12, 8  ;;  %vm2024_vm3 = vcmp.eq.s32.totalorder %v1747_v12, 9 }
  0xeb   : > { %v611_v7 = vsel %vm2023_vm2, %v1736_v3, 0.0  ;;  %v502_v8 = vadd.f32 %v501_v63, %v500_v57  ;;  %v590_v9 = vadd.f32 %v589_v0, %v588_v61  ;;  %v810_v14 = vsel %vm788_vm9, %v809_v1, %v479_v62 }
  0xec   : > { %v612_v10 = vrot.slane %v611_v7, 4  ;;  %v524_v11 = vrot.slane %v523_v2, 1  ;;  %v546_v15 = vadd.f32 %v545_v5, %v544_v59  ;;  %v569_v16 = vadd.f32 %v568_v6, %v567_v60 }
  0xed   : > { %v634_v17 = vsel %vm2024_vm3, %v1736_v3, 0.0  ;;  %v591_v18 = vrot.slane %v590_v9, 2  ;;  %v811_v19 = vsel %vm790_vm10, %v810_v14, %v502_v8  ;;  %v657_v25 = vsel %vm648_vm6, %v1736_v3, 0.0 }
  0xee   : > { %v613_v20 = vadd.f32 %v612_v10, %v611_v7  ;;  %v635_v21 = vrot.slane %v634_v17, 4  ;;  %v525_v22 = vadd.f32 %v524_v11, %v523_v2  ;;  %v547_v23 = vrot.slane %v546_v15, 1 }
  0xef   : > { %v570_v24 = vrot.slane %v569_v16, 1  ;;  %v592_v26 = vadd.f32 %v591_v18, %v590_v9  ;;  %v658_v29 = vrot.slane %v657_v25, 4  ;;  %vm2025_vm2 = vcmp.eq.s32.totalorder %v1747_v12, 11 }
  0xf0   : > { %v614_v27 = vrot.slane %v613_v20, 2  ;;  %v636_v28 = vadd.f32 %v635_v21, %v634_v17  ;;  %v548_v30 = vadd.f32 %v547_v23, %v546_v15  ;;  %v812_v32 = vsel %vm792_vm11, %v811_v19, %v525_v22 }
  0xf1   : > { %v571_v31 = vadd.f32 %v570_v24, %v569_v16  ;;  %v680_v33 = vsel %vm2025_vm2, %v1736_v3, 0.0  ;;  %v593_v34 = vrot.slane %v592_v26, 1  ;;  %v659_v37 = vadd.f32 %v658_v29, %v657_v25 }
  0xf2   : > { %v615_v35 = vadd.f32 %v614_v27, %v613_v20  ;;  %v637_v36 = vrot.slane %v636_v28, 2  ;;  %v813_v38 = vsel %vm794_vm12, %v812_v32, %v548_v30  ;;  %v681_v39 = vrot.slane %v680_v33, 4 }
  0xf3   : > { %v703_v40 = vsel %vm694_vm5, %v1736_v3, 0.0  ;;  %vm2026_vm3 = vcmp.eq.s32.totalorder %v1747_v12, 13  ;;  %v594_v42 = vadd.f32 %v593_v34, %v592_v26  ;;  %v814_v43 = vsel %vm796_vm13, %v813_v38, %v571_v31 }
  0xf4   : > { %v726_v41 = vsel %vm2026_vm3, %v1736_v3, 0.0  ;;  %v616_v45 = vrot.slane %v615_v35, 1  ;;  %v638_v46 = vadd.f32 %v637_v36, %v636_v28  ;;  %v660_v47 = vrot.slane %v659_v37, 2 }
  0xf5   : > { %v682_v48 = vadd.f32 %v681_v39, %v680_v33  ;;  %v704_v49 = vrot.slane %v703_v40, 4  ;;  %v727_v50 = vrot.slane %v726_v41, 4  ;;  %v815_v51 = vsel %vm798_vm14, %v814_v43, %v594_v42  ;;  %v848_v43 = vld [vmem:[#allocation3 + $0x8] sm:$0xff] }
  0xf6   : > { %v617_v52 = vadd.f32 %v616_v45, %v615_v35  ;;  %v639_v53 = vrot.slane %v638_v46, 1  ;;  %v749_v54 = vsel %vm740_vm15, %v1736_v3, 0.0  ;;  %v849_v55 = vadd.f32 %v847_v44, %v815_v51 }
  0xf7   : > { %v661_v56 = vadd.f32 %v660_v47, %v659_v37  ;;  %v683_v57 = vrot.slane %v682_v48, 2  ;;  %v705_v58 = vadd.f32 %v704_v49, %v703_v40  ;;  %v728_v60 = vadd.f32 %v727_v50, %v726_v41 }
  0xf8   : > { %v640_v59 = vadd.f32 %v639_v53, %v638_v46  ;;  %v750_v61 = vrot.slane %v749_v54, 4  ;;  %v772_v62 = vsel %vm763_vm7, %v1736_v3, 0.0  ;;  %851 = vst [vmem:[#allocation3] sm:$0xff] %v849_v55  ;;  %v434_v8 = vsel %vm418_vm0, %v1740_v4, 0.0 }
  0xf9   : > { %v662_v63 = vrot.slane %v661_v56, 1  ;;  %v684_v0 = vadd.f32 %v683_v57, %v682_v48  ;;  %v706_v1 = vrot.slane %v705_v58, 2  ;;  %v773_v2 = vrot.slane %v772_v62, 4 }
  0xfa   : > { %v729_v5 = vrot.slane %v728_v60, 2  ;;  %v751_v6 = vadd.f32 %v750_v61, %v749_v54  ;;  %v816_v7 = vsel %vm786_vm8, %v617_v52, %v640_v59  ;;  %v435_v3 = vrot.slane %v434_v8, 4 }
  0xfb   : > { %v663_v9 = vadd.f32 %v662_v63, %v661_v56  ;;  %v685_v14 = vrot.slane %v684_v0, 1  ;;  %v707_v10 = vadd.f32 %v706_v1, %v705_v58  ;;  %v774_v11 = vadd.f32 %v773_v2, %v772_v62 }
  0xfc   : > { %v730_v15 = vadd.f32 %v729_v5, %v728_v60  ;;  %v752_v16 = vrot.slane %v751_v6, 2  ;;  %v457_v17 = vsel %vm441_vm1, %v1740_v4, 0.0  ;;  %v436_v24 = vadd.f32 %v435_v3, %v434_v8 }
  0xfd   : > { %v686_v18 = vadd.f32 %v685_v14, %v684_v0  ;;  %v708_v19 = vrot.slane %v707_v10, 1  ;;  %v775_v20 = vrot.slane %v774_v11, 2  ;;  %v817_v21 = vsel %vm788_vm9, %v816_v7, %v663_v9 }
  0xfe   : > { %v731_v22 = vrot.slane %v730_v15, 1  ;;  %v753_v23 = vadd.f32 %v752_v16, %v751_v6  ;;  %v458_v25 = vrot.slane %v457_v17, 4  ;;  %vm2027_vm0 = vcmp.eq.s32.totalorder %v1747_v12, 2 }
  0xff   : > { %v709_v26 = vadd.f32 %v708_v19, %v707_v10  ;;  %v776_v27 = vadd.f32 %v775_v20, %v774_v11  ;;  %v818_v28 = vsel %vm790_vm10, %v817_v21, %v686_v18  ;;  %v480_v29 = vsel %vm2027_vm0, %v1740_v4, 0.0 }
 0x100   : > { %v732_v30 = vadd.f32 %v731_v22, %v730_v15  ;;  %v754_v31 = vrot.slane %v753_v23, 1  ;;  %v437_v32 = vrot.slane %v436_v24, 2  ;;  %v459_v33 = vadd.f32 %v458_v25, %v457_v17 }
 0x101   : > { %v777_v34 = vrot.slane %v776_v27, 1  ;;  %v819_v35 = vsel %vm792_vm11, %v818_v28, %v709_v26  ;;  %v481_v36 = vrot.slane %v480_v29, 4  ;;  %vm2028_vm1 = vcmp.eq.s32.totalorder %v1747_v12, 3 }
 0x102   : > { %v503_v37 = vsel %vm2028_vm1, %v1740_v4, 0.0  ;;  %v755_v38 = vadd.f32 %v754_v31, %v753_v23  ;;  %v820_v39 = vsel %vm794_vm12, %v819_v35, %v732_v30  ;;  %v438_v40 = vadd.f32 %v437_v32, %v436_v24 }
 0x103   : > { %v460_v41 = vrot.slane %v459_v33, 2  ;;  %v778_v42 = vadd.f32 %v777_v34, %v776_v27  ;;  %v482_v44 = vadd.f32 %v481_v36, %v480_v29  ;;  %v504_v45 = vrot.slane %v503_v37, 4 }
 0x104   : > { %v526_v46 = vsel %vm510_vm4, %v1740_v4, 0.0  ;;  %v821_v47 = vsel %vm796_vm13, %v820_v39, %v755_v38  ;;  %v439_v48 = vrot.slane %v438_v40, 1  ;;  %vm2029_vm2 = vcmp.eq.s32.totalorder %v1747_v12, 5 }
 0x105   : > { %v461_v49 = vadd.f32 %v460_v41, %v459_v33  ;;  %v527_v50 = vrot.slane %v526_v46, 4  ;;  %v822_v51 = vsel %vm798_vm14, %v821_v47, %v778_v42  ;;  %v483_v52 = vrot.slane %v482_v44, 2 }
 0x106   : > { %v505_v53 = vadd.f32 %v504_v45, %v503_v37  ;;  %v549_v54 = vsel %vm2029_vm2, %v1740_v4, 0.0  ;;  %v850_v55 = vadd.f32 %v848_v43, %v822_v51  ;;  %v440_v56 = vadd.f32 %v439_v48, %v438_v40  ;;  %v853_v48 = vld [vmem:[#allocation4] sm:$0xff] }
 0x107   : > { %v462_v57 = vrot.slane %v461_v49, 1  ;;  %v528_v58 = vadd.f32 %v527_v50, %v526_v46  ;;  %v484_v59 = vadd.f32 %v483_v52, %v482_v44  ;;  %v550_v61 = vrot.slane %v549_v54, 4 }
 0x108   : > { %v506_v60 = vrot.slane %v505_v53, 2  ;;  %vm2030_vm4 = vcmp.eq.s32.totalorder %v1747_v12, 6  ;;  %852 = vst [vmem:[#allocation3 + $0x8] sm:$0xff] %v850_v55  ;;  %vm2031_vm3 = vcmp.eq.s32.totalorder %v1747_v12, 7  ;;  %vm2032_vm0 = vcmp.eq.s32.totalorder %v1747_v12, 8 }
 0x109   : > { %v572_v62 = vsel %vm2030_vm4, %v1740_v4, 0.0  ;;  %v463_v63 = vadd.f32 %v462_v57, %v461_v49  ;;  %v529_v0 = vrot.slane %v528_v58, 2  ;;  %v595_v2 = vsel %vm2031_vm3, %v1740_v4, 0.0 }
 0x10a   : > { %v573_v1 = vrot.slane %v572_v62, 4  ;;  %v485_v5 = vrot.slane %v484_v59, 1  ;;  %v507_v6 = vadd.f32 %v506_v60, %v505_v53  ;;  %v551_v7 = vadd.f32 %v550_v61, %v549_v54 }
 0x10b   : > { %v596_v8 = vrot.slane %v595_v2, 4  ;;  %v530_v9 = vadd.f32 %v529_v0, %v528_v58  ;;  %v825_v10 = vsel %vm786_vm8, %v440_v56, %v463_v63  ;;  %v618_v11 = vsel %vm2032_vm0, %v1740_v4, 0.0 }
 0x10c   : > { %v574_v14 = vadd.f32 %v573_v1, %v572_v62  ;;  %v486_v15 = vadd.f32 %v485_v5, %v484_v59  ;;  %v508_v16 = vrot.slane %v507_v6, 1  ;;  %v552_v3 = vrot.slane %v551_v7, 2 }
 0x10d   : > { %v597_v17 = vadd.f32 %v596_v8, %v595_v2  ;;  %v531_v18 = vrot.slane %v530_v9, 1  ;;  %v619_v20 = vrot.slane %v618_v11, 4  ;;  %vm2033_vm1 = vcmp.eq.s32.totalorder %v1747_v12, 9 }
 0x10e   : > { %v575_v19 = vrot.slane %v574_v14, 2  ;;  %v641_v21 = vsel %vm2033_vm1, %v1740_v4, 0.0  ;;  %v509_v22 = vadd.f32 %v508_v16, %v507_v6  ;;  %v553_v23 = vadd.f32 %v552_v3, %v551_v7 }
 0x10f   : > { %v598_v24 = vrot.slane %v597_v17, 2  ;;  %v826_v25 = vsel %vm788_vm9, %v825_v10, %v486_v15  ;;  %v532_v26 = vadd.f32 %v531_v18, %v530_v9  ;;  %v620_v28 = vadd.f32 %v619_v20, %v618_v11 }
 0x110   : > { %v576_v27 = vadd.f32 %v575_v19, %v574_v14  ;;  %v642_v29 = vrot.slane %v641_v21, 4  ;;  %v554_v30 = vrot.slane %v553_v23, 1  ;;  %v827_v32 = vsel %vm790_vm10, %v826_v25, %v509_v22  ;;  %v859_v22 = vld [vmem:[#allocation5] sm:$0x1] }
 0x111   : > { %v599_v31 = vadd.f32 %v598_v24, %v597_v17  ;;  %v664_v33 = vsel %vm648_vm6, %v1740_v4, 0.0  ;;  %v828_v35 = vsel %vm792_vm11, %v827_v32, %v532_v26  ;;  %v621_v36 = vrot.slane %v620_v28, 2 }
 0x112   : > { %v577_v34 = vrot.slane %v576_v27, 1  ;;  %v643_v37 = vadd.f32 %v642_v29, %v641_v21  ;;  %v555_v38 = vadd.f32 %v554_v30, %v553_v23  ;;  %v665_v40 = vrot.slane %v664_v33, 4 }
 0x113   : > { %v600_v39 = vrot.slane %v599_v31, 1  ;;  %vm2034_vm2 = vcmp.eq.s32.totalorder %v1747_v12, 11  ;;  %v622_v43 = vadd.f32 %v621_v36, %v620_v28  ;;  %v710_v50 = vsel %vm694_vm5, %v1740_v4, 0.0 }
 0x114   : > { %v687_v41 = vsel %vm2034_vm2, %v1740_v4, 0.0  ;;  %v578_v42 = vadd.f32 %v577_v34, %v576_v27  ;;  %v644_v44 = vrot.slane %v643_v37, 2  ;;  %v829_v47 = vsel %vm794_vm12, %v828_v35, %v555_v38 }
 0x115   : > { %v688_v45 = vrot.slane %v687_v41, 4  ;;  %v601_v46 = vadd.f32 %v600_v39, %v599_v31  ;;  %v666_v49 = vadd.f32 %v665_v40, %v664_v33  ;;  %v623_v52 = vrot.slane %v622_v43, 1  ;;  %v854_v40 = vld [vmem:[#allocation4 + $0x8] sm:$0xff] }
 0x116   : > { %v830_v51 = vsel %vm796_vm13, %v829_v47, %v578_v42  ;;  %v645_v53 = vadd.f32 %v644_v44, %v643_v37  ;;  %v711_v57 = vrot.slane %v710_v50, 4  ;;  %vm2035_vm6 = vcmp.eq.s32.totalorder %v1747_v12, 13  ;;  %v880_v44 = vld [vmem:[#allocation2] sm:$0xff] (!%p1113_p11)  ;;  %v887_v47 = vld [vmem:[#allocation3 + $0x8] sm:$0xff] (!%p1113_p11) }
 0x117   : > { %v689_v54 = vadd.f32 %v688_v45, %v687_v41  ;;  %v831_v55 = vsel %vm798_vm14, %v830_v51, %v601_v46  ;;  %v667_v56 = vrot.slane %v666_v49, 2  ;;  %v733_v58 = vsel %vm2035_vm6, %v1740_v4, 0.0  ;;  %v886_v45 = vld [vmem:[#allocation3] sm:$0xff] (!%p1113_p11)  ;;  %882 = vadd.xlane.f32.xlu0 (!%p1113_p11), %v880_v44  ;;  %v881_v46 = vld [vmem:[#allocation2 + $0x8] sm:$0xff] (!%p1113_p11) }
 0x118   : > { %v855_v59 = vadd.f32 %v853_v48, %v831_v55  ;;  %v624_v60 = vadd.f32 %v623_v52, %v622_v43  ;;  %v646_v61 = vrot.slane %v645_v53, 1  ;;  %v712_v0 = vadd.f32 %v711_v57, %v710_v50  ;;  %888 = vadd.xlane.f32.xlu1 (!%p1113_p11), %v886_v45 }
 0x119   : > { %v690_v62 = vrot.slane %v689_v54, 2  ;;  %v668_v63 = vadd.f32 %v667_v56, %v666_v49  ;;  %v734_v1 = vrot.slane %v733_v58, 4  ;;  %v756_v2 = vsel %vm740_vm15, %v1740_v4, 0.0 }
 0x11a   : > { %857 = vst [vmem:[#allocation4] sm:$0xff] %v855_v59  ;;  %v647_v5 = vadd.f32 %v646_v61, %v645_v53  ;;  %v757_v7 = vrot.slane %v756_v2, 4  ;;  %v779_v8 = vsel %vm763_vm7, %v1740_v4, 0.0  ;;  %v713_v14 = vrot.slane %v712_v0, 2 }
 0x11b   : > { %v691_v6 = vadd.f32 %v690_v62, %v689_v54  ;;  %v669_v9 = vrot.slane %v668_v63, 1  ;;  %v735_v10 = vadd.f32 %v734_v1, %v733_v58  ;;  %v780_v11 = vrot.slane %v779_v8, 4  ;;  %884 = vadd.xlane.f32.xlu0 (!%p1113_p11), %v881_v46 }
 0x11c   : > { %v758_v16 = vadd.f32 %v757_v7, %v756_v2  ;;  %v832_v3 = vsel %vm786_vm8, %v624_v60, %v647_v5  ;;  %v410_v17 = vrot.slane %v1749_v13, 1  ;;  %v714_v19 = vadd.f32 %v713_v14, %v712_v0  ;;  %890 = vadd.xlane.f32.xlu1 (!%p1113_p11), %v887_v47 }
 0x11d   : > { %v692_v15 = vrot.slane %v691_v6, 1  ;;  %v670_v18 = vadd.f32 %v669_v9, %v668_v63  ;;  %v736_v20 = vrot.slane %v735_v10, 2  ;;  %v781_v21 = vadd.f32 %v780_v11, %v779_v8 }
 0x11e   : > { %v759_v24 = vrot.slane %v758_v16, 2  ;;  %v411_v12 = vadd.f32 %v410_v17, %v1749_v13  ;;  %v715_v4 = vrot.slane %v714_v19, 1  ;;  %vm919_vm7 = vcmask (!%p1113_p11), 7168  }
 0x11f   : > { %v693_v23 = vadd.f32 %v692_v15, %v691_v6  ;;  %v737_v25 = vadd.f32 %v736_v20, %v735_v10  ;;  %v782_v26 = vrot.slane %v781_v21, 2  ;;  %v833_v27 = vsel %vm788_vm9, %v832_v3, %v670_v18 }
 0x120   : > { %v760_v28 = vadd.f32 %v759_v24, %v758_v16  ;;  %v860_v30 = vadd.f32 %v859_v22, %v411_v12  ;;  %v716_v31 = vadd.f32 %v715_v4, %v714_v19 }
 0x121   : > { %v834_v29 = vsel %vm790_vm10, %v833_v27, %v693_v23  ;;  %v738_v32 = vrot.slane %v737_v25, 1  ;;  %v783_v33 = vadd.f32 %v782_v26, %v781_v21  ;;  %v892_v48 = vld [vmem:[#allocation4] sm:$0xff] (!%p1113_p11) }
 0x122   : > { %v761_v34 = vrot.slane %v760_v28, 1  ;;  %861 = vst [vmem:[#allocation5] sm:$0x1] %v860_v30  ;;  %v835_v37 = vsel %vm792_vm11, %v834_v29, %v716_v31  ;;  %894 = vadd.xlane.f32.xlu0 (!%p1113_p11), %v892_v48 }
 0x123   : > { %v739_v35 = vadd.f32 %v738_v32, %v737_v25  ;;  %v784_v36 = vrot.slane %v783_v33, 1 }
 0x124   : > { %v762_v38 = vadd.f32 %v761_v34, %v760_v28  ;;  %866 = sbr.rel (%p1113_p11) target bundleno = 665 (0x299), region = 88 }
 0x125   : > { %v785_v13 = vadd.f32 %v784_v36, %v783_v33  ;;  %v836_v39 = vsel %vm794_vm12, %v835_v37, %v739_v35 }
 0x126   : > { %v837_v41 = vsel %vm796_vm13, %v836_v39, %v762_v38 }
 0x127   : > { %v838_v42 = vsel %vm798_vm14, %v837_v41, %v785_v13 }
 0x128   : > { %v856_v43 = vadd.f32 %v854_v40, %v838_v42 }
 0x129   : > { %v868_v50 = vld [vmem:[#allocation5] sm:$0x1] (!%p1113_p11) }
 0x12a   : > { %858 = vst [vmem:[#allocation4 + $0x8] sm:$0xff] %v856_v43  ;;  %v869_v51 = vsel (!%p1113_p11), %vm786_vm8, %v868_v50, 0.0 }
 0x12b   : > { %870 = vadd.xlane.f32.xlu0 %v869_v51 }
 0x131   : > { %v893_v49 = vld [vmem:[#allocation4 + $0x8] sm:$0xff] }
 0x132   : > { %896 = vadd.xlane.f32.xlu1 %v893_v49 }
 0x1a4   : > { %v883_v52 = vpop.xlane.xlu0 %882 }
 0x1a5   : > { %v898_v53 = vmax.f32 %v883_v52, 2.0  ;;  %v889_v57 = vpop.xlane.xlu1 %888  ;;  %vm914_vm5 = vcmp.gt.f32.partialorder %v883_v52, 1.5 }
 0x1a6   : > { %v900_v59 = vmul.f32 %v889_v57, %v889_v57 }
 0x1a7   : > { %1239 = vrcp.f32 %v898_v53  ;;  %v1114_v54 = vadd.f32 -1.0, %v898_v53 }
 0x1a8   : > { %v885_v55 = vpop.xlane.xlu0 %884 }
 0x1a9   : > { %v899_v56 = vmax.f32 %v885_v55, 2.0  ;;  %1241 = vrcp.f32 %v1114_v54  ;;  %v891_v60 = vpop.xlane.xlu1 %890  ;;  %vm915_vm8 = vcmp.gt.f32.partialorder %v885_v55, 1.5 }
 0x1aa   : > { %v901_v63 = vmul.f32 %v891_v60, %v891_v60 }
 0x1ab   : > { %1243 = vrcp.f32 %v899_v56  ;;  %v1115_v58 = vadd.f32 -1.0, %v899_v56 }
 0x1ad   : > { %1245 = vrcp.f32 %v1115_v58 }
 0x1af   : > { %v895_v62 = vpop.xlane.xlu0 %894 }
 0x1b1   : > { %v1240_v61 = vpop.eup %1239 }
 0x1b2   : > { %v903_v0 = vmul.f32 %v1240_v61, %v900_v59 }
 0x1b3   : > { %v1242_v1 = vpop.eup %1241 }
 0x1b4   : > { %v906_v2 = vsub.f32 %v895_v62, %v903_v0 }
 0x1b5   : > { %v1244_v5 = vpop.eup %1243 }
 0x1b6   : > { %v911_v7 = vmul.f32 %v1242_v1, %v906_v2  ;;  %v905_v8 = vmul.f32 %v1244_v5, %v901_v63 }
 0x1b7   : > { %v1246_v14 = vpop.eup %1245 }
 0x1b8   : > { %v916_v11 = vsel %vm914_vm5, %v911_v7, 0.0  ;;  %v871_v18 = vpop.xlane.xlu0 %870 }
 0x1b9   : > { %v920_v16 = vsel %vm919_vm7, %v916_v11, 0.0  ;;  %v872_v19 = vrot.slane %v871_v18, 4 }
 0x1bb   : > { %v873_v20 = vadd.f32 %v872_v19, %v871_v18 }
 0x1bd   : > { %v874_v21 = vrot.slane %v873_v20, 2 }
 0x1bf   : > { %v897_v6 = vpop.xlane.xlu1 %896  ;;  %v875_v22 = vadd.f32 %v874_v21, %v873_v20 }
 0x1c0   : > { %v907_v9 = vsub.f32 %v897_v6, %v905_v8 }
 0x1c1   : > { %v876_v23 = vrot.slane %v875_v22, 1 }
 0x1c2   : > { %v913_v10 = vmul.f32 %v1246_v14, %v907_v9 }
 0x1c3   : > { %v877_v24 = vadd.f32 %v876_v23, %v875_v22 }
 0x1c4   : > { %v917_v15 = vsel %vm915_vm8, %v913_v10, 0.0 }
 0x1c5   : > { %v921_v3 = vsel %vm919_vm7, %v917_v15, 0.0  ;;  %1124 = vpush %v877_v24 }
 0x1c6   : > { %v922_v17 = vadd.f32 %v921_v3, %v920_v16 }
 0x1c8   : > { %923 = vadd.xlane.f32.xlu1 %v922_v17 }
 0x1f6   : > { %s1125_s21 = spop %1124 }
 0x1f7   : > { %s879_s13 = smul.f32 %s1125_s21, %s867_s23 }
 0x255   : > { %v924_v12 = vpop.xlane.xlu1 %923 }
 0x256   : > { %v925_v4 = vrot.slane %v924_v12, 4 }
 0x258   : > { %v926_v25 = vadd.f32 %v925_v4, %v924_v12 }
 0x25a   : > { %v927_v26 = vrot.slane %v926_v25, 2 }
 0x25c   : > { %v928_v27 = vadd.f32 %v927_v26, %v926_v25 }
 0x25e   : > { %v929_v28 = vrot.slane %v928_v27, 1 }
 0x260   : > { %v930_v29 = vadd.f32 %v929_v28, %v928_v27 }
 0x262   : > { %1126 = vpush %v930_v29 }
 0x293   : > { %s1127_s19 = spop %1126 }
 0x294   : > { %s932_s24 = sadd.f32 %s1127_s19, %s879_s13 }
 0x296   : > { %s933_s20 = sadd.f32 %s932_s24, %s918_s27 }
 0x298   : > { %935 = sst [smem:[#allocation6]] %s933_s20 }
 0x299 PF: > { %s940_s9 = sld [smem:[#allocation6]]  ;;  %p1195_p13 = scmp.eq.s32.totalorder %s1527_s8, 2 }
 0x29a   : > { %s1380_s12 = scalar_lea.hbm %s1991_s7, 16 }
 0x29b   : > { %p1381_p8 = scmp.ne.s32.totalorder %s1991_s7, %s1380_s12  ;;  %p1386_p4 = scmp.lt.u32.totalorder %s1380_s12, %s1991_s7 }
 0x29d   : > { %p1382_p2 = pnand %p1381_p8, %p1195_p13 }
 0x29f   : > { %1155 = sst [smem:[#allocation21]] (%p1195_p13), %s940_s9  ;;  %p1383_p6 = pneg %p1382_p2 }
 0x2a1   : > { %p1388_p3 = pnand %p1386_p4, %p1383_p6 }
 0x2a3   : > { %1391 = shalt.err (!%p1388_p3)
}
 0x2a4   : > { %s1462_s11 = smov [#allocation21]  }
 0x2a5   : > { %1157 = dma.smem_to_hbm (%p1195_p13), %s1462_s11, 16, %s1991_s7, [#allocation10]  }
 0x2a6   : > { %1433 = dma.done.wait (%p1195_p13), [#allocation10], 16  }
 0x2a7   : > { %1435 = vsyncadd (%p1195_p13), [#allocation10], 4294967280 }
 0x2a8   : > { %956 = sfence }
 0x2a9 PF: > { %p25_p9 = scmp.ge.s32.totalorder %s1613_s15, 5   ;;  %s2036_s24 = smov %s1442_s25 }
 0x2aa   : > { %s2037_s25 = smov %s1446_s26  ;;  %s2038_s26 = smov %s1624_s10 }
 0x2ab   : > { %s2039_s27 = smov %s1613_s15  ;;  %27 = sbr.rel (!%p25_p9) target bundleno = 10 (0xa), region = 139 }
 0x2b2   :  { %962 = vsyncpa [#allocation8], 1 }
 0x2b3   :  { %964 = vsyncpa [#allocation8 + $0x1], 1 }
 0x2b4   :  { %965 = vsyncpa [#allocation20], 1 }
 0x2b5   :  { %967 = vsyncpa [#allocation20 + $0x1], 1 }
 0x2b6   :  { %968 = vsyncpa [#allocation9], 1 }
 0x2b7   :  { %970 = vsyncpa [#allocation9 + $0x1], 1 }
 0x2b8   :  { %971 = vsyncpa [#allocation10], 1 }
 0x2b9   :  { %973 = vsyncpa [#allocation10 + $0x1], 1 }
 0x2ba   :  { %974 = vsyncpa [#allocation11], 1 }
 0x2bb   :  { %976 = vsyncpa [#allocation11 + $0x1], 1 }
 0x2bc   :  { %977 = vsyncpa [#allocation14], 1 }
 0x2bd   :  { %978 = vsyncpa [#allocation17], 1 }

</bundles_post_ra>
